<compile_context>
chip_gen: v7x
topology: tpu7x:2x2x1
jax: 0.10.0
libtpu: 0.0.40
codegen_flags: <defaults>
</compile_context>

<pallas_src>
import jax
import jax.numpy as jnp
import numpy as np
from jax.experimental import pallas as pl
from jax.experimental.pallas import tpu as pltpu

EPS = 1e-5
VMEM_LIMIT = 32 * 1024 * 1024  # raises v5e's 16 MiB default; <= v6e/v7x defaults


def _round_up(x, m):
    return ((x + m - 1) // m) * m


# ---------------------------------------------------------------------------
# Pallas kernels
# ---------------------------------------------------------------------------
def _gemm_bias_elu_kernel(w_ref, x_ref, b_ref, o_ref):
    # ELU((Cout, K) @ (K, tm) + bias); lane-dense output tile, bf16 store.
    acc = jnp.dot(w_ref[...], x_ref[...], preferred_element_type=jnp.float32)
    y = acc + b_ref[...]
    y = jnp.where(y > 0.0, y, jnp.exp(y) - 1.0)
    o_ref[...] = y.astype(o_ref.dtype)


def _make_luconv_kernel(tap_offsets, cout, k_pad, tile, g_blk, n_int_blk,
                        with_residual):
    """k=3 / pad=1 conv + folded BN + ELU (+ fused residual add + ELU).

    One grid step produces one (Cout, tile) block of the flat, zero-padded,
    channels-major store layout.  xl/xc/xr are the left / centre / right
    neighbouring tiles (halo window); the 27 conv taps are static lane slices
    of that window, stacked into a (K_pad, tile) VMEM scratch and contracted
    with the (Cout, K_pad) folded-BN weights in a single MXU GEMM.
    """
    n_taps = len(tap_offsets)
    k_real = n_taps * cout

    def body(xl_ref, xc_ref, xr_ref, w_ref, b_ref, m_ref, r_ref, o_ref,
             stk_ref):
        j = pl.program_id(0)
        interior = jnp.logical_and(j >= g_blk, j < g_blk + n_int_blk)

        @pl.when(jnp.logical_not(interior))
        def _():
            # Margin blocks stay zero so the next layer's halo reads are valid.
            o_ref[...] = jnp.zeros_like(o_ref)

        @pl.when(interior)
        def _():
            # 3-tile halo window; single bf16 -> f32 cast (aligned pieces).
            xw = jnp.concatenate(
                [xl_ref[...], xc_ref[...], xr_ref[...]], axis=1
            ).astype(jnp.float32)                              # (Cout, 3*tile)
            # Tap-stacked operand: row t*Cin + c  <->  channel c, tap t.
            for t, off in enumerate(tap_offsets):
                stk_ref[t * cout:(t + 1) * cout, :] = (
                    xw[:, tile + off:2 * tile + off])
            if k_pad > k_real:
                stk_ref[k_real:, :] = jnp.zeros((k_pad - k_real, tile),
                                                jnp.float32)
            stacked = stk_ref[...].astype(jnp.bfloat16)
            acc = jnp.dot(w_ref[...], stacked,
                          preferred_element_type=jnp.float32)
            y = acc + b_ref[...]                               # folded-BN bias
            y = jnp.where(y > 0.0, y, jnp.exp(y) - 1.0)        # LUConv ELU
            if with_residual:                                  # relu2(out+down)
                y = y + r_ref[...].astype(jnp.float32)
                y = jnp.where(y > 0.0, y, jnp.exp(y) - 1.0)
            o_ref[...] = (y * m_ref[...]).astype(o_ref.dtype)  # zero halos

    if with_residual:
        def kernel(xl, xc, xr, w, b, m, r, o, stk):
            body(xl, xc, xr, w, b, m, r, o, stk)
    else:
        def kernel(xl, xc, xr, w, b, m, o, stk):
            body(xl, xc, xr, w, b, m, None, o, stk)
    return kernel


# ---------------------------------------------------------------------------
# pallas_call wrappers
# ---------------------------------------------------------------------------
def gemm_bias_elu(w_bf, cols_bf, bias_f32):
    """bf16 = ELU((Cout,K) @ (K,M) + bias); M (lanes) must be a 128-multiple."""
    cout, k = w_bf.shape
    m = cols_bf.shape[1]
    tm = next(t for t in (512, 256, 128) if m % t == 0)
    return pl.pallas_call(
        _gemm_bias_elu_kernel,
        out_shape=jax.ShapeDtypeStruct((cout, m), jnp.bfloat16),
        grid=(m // tm,),
        in_specs=[
            pl.BlockSpec((cout, k), lambda i: (0, 0)),      # weights resident
            pl.BlockSpec((k, tm), lambda i: (0, i)),
            pl.BlockSpec((cout, 1), lambda i: (0, 0)),
        ],
        out_specs=pl.BlockSpec((cout, tm), lambda i: (0, i)),
        compiler_params=pltpu.CompilerParams(
            dimension_semantics=("parallel",),
            vmem_limit_bytes=VMEM_LIMIT),
    )(w_bf, cols_bf, bias_f32.reshape(cout, 1))


def luconv(x_store_bf, w_stacked_bf, bias_f32, mask_store, *, tap_offsets,
           tile, g_blk, n_int_blk, out_dtype, residual_bf=None):
    cout, w_store = x_store_bf.shape
    k_pad = w_stacked_bf.shape[1]
    n_blk = w_store // tile
    with_res = residual_bf is not None
    kernel = _make_luconv_kernel(tuple(tap_offsets), cout, k_pad, tile, g_blk,
                                 n_int_blk, with_res)
    in_specs = [
        pl.BlockSpec((cout, tile), lambda j: (0, jnp.maximum(j - 1, 0))),
        pl.BlockSpec((cout, tile), lambda j: (0, j)),
        pl.BlockSpec((cout, tile), lambda j: (0, jnp.minimum(j + 1, n_blk - 1))),
        pl.BlockSpec((cout, k_pad), lambda j: (0, 0)),      # stacked weights
        pl.BlockSpec((cout, 1), lambda j: (0, 0)),          # folded-BN bias
        pl.BlockSpec((1, tile), lambda j: (0, j)),          # halo/tail mask
    ]
    args = [x_store_bf, x_store_bf, x_store_bf, w_stacked_bf,
            bias_f32.reshape(cout, 1), mask_store]
    if with_res:
        in_specs.append(pl.BlockSpec((cout, tile), lambda j: (0, j)))
        args.append(residual_bf)
    return pl.pallas_call(
        kernel,
        out_shape=jax.ShapeDtypeStruct((cout, w_store), out_dtype),
        grid=(n_blk,),
        in_specs=in_specs,
        out_specs=pl.BlockSpec((cout, tile), lambda j: (0, j)),
        scratch_shapes=[pltpu.VMEM((k_pad, tile), jnp.float32)],
        compiler_params=pltpu.CompilerParams(
            dimension_semantics=("parallel",),
            vmem_limit_bytes=VMEM_LIMIT),
    )(*args)


# ---------------------------------------------------------------------------
# JAX glue: BN folding, layout plumbing
# ---------------------------------------------------------------------------
def _bn_scale_bias(conv_bias, bn):
    gamma, beta, mean, var = bn
    scale = gamma / jnp.sqrt(var + EPS)
    bias = (conv_bias - mean) * scale + beta
    return scale, bias


def _down_cols(x_ncdhw):
    # NCDHW -> (8*Cin, N*Do*Ho*Wo); K order (cin, kz, ky, kx).  Stride-2 k=2
    # patches don't overlap so this is a pure permutation (no inflation).
    n, c, d, h, w = x_ncdhw.shape
    p = x_ncdhw.reshape(n, c, d // 2, 2, h // 2, 2, w // 2, 2)
    p = p.transpose(1, 3, 5, 7, 0, 2, 4, 6)    # (C,kz,ky,kx,N,Do,Ho,Wo)
    return p.reshape(c * 8, -1)


def _pick_tile(cout, off_max):
    # Bound the (Cout, tile) f32 accumulator's vreg footprint, but the tile
    # must also cover the largest tap offset so halo reads only touch the
    # immediate neighbour blocks.
    if cout <= 32:
        tile = 512
    elif cout <= 64:
        tile = 256
    else:
        tile = 128
    return max(tile, _round_up(off_max, 128))


@jax.jit
def down_transition_forward(x_ncdhw, params):
    """DownTransition.forward (elu=True, dropout=False).  NCDHW in/out."""
    x = x_ncdhw.astype(jnp.float32)
    n, cin, d, h, w = x.shape
    do, ho, wo = d // 2, h // 2, w // 2
    cout = 2 * cin
    dp, hp, wp = do + 2, ho + 2, wo + 2

    # ---- down = relu1(bn1(down_conv(x))) as one lane-dense fused GEMM ------
    dscale, dbias = _bn_scale_bias(params["down_b"], params["bn1"])
    wdown = (params["down_w"] * dscale[:, None, None, None, None]).reshape(cout, -1)
    cols = _down_cols(x)
    m = cols.shape[1]
    m_pad = _round_up(m, 128)
    cols = jnp.pad(cols, ((0, 0), (0, m_pad - m)))
    down = gemm_bias_elu(wdown.astype(jnp.bfloat16), cols.astype(jnp.bfloat16),
                         dbias.astype(jnp.float32))[:, :m]     # (Cout, M) bf16

    # ---- flat, zero-padded, channels-major store layout ---------------------
    off_max = hp * wp + wp + 1
    tile = _pick_tile(cout, off_max)
    s = n * dp * hp * wp
    s_pad = _round_up(s, tile)
    g = _round_up(max(off_max, 128), tile)     # zero margins (left & right)
    w_store = g + s_pad + g
    g_blk, n_int_blk = g // tile, s_pad // tile

    tap_offsets = tuple((dz - 1) * hp * wp + (dy - 1) * wp + (dx - 1)
                        for dz in range(3) for dy in range(3) for dx in range(3))

    # mask of valid (non-halo, non-tail) columns; constant under jit
    mvol = np.zeros((n, dp, hp, wp), np.float32)
    mvol[:, 1:1 + do, 1:1 + ho, 1:1 + wo] = 1.0
    mask_np = np.zeros((1, w_store), np.float32)
    mask_np[0, g:g + s] = mvol.reshape(-1)
    mask_store = jnp.asarray(mask_np)

    # down activations in the store layout (bf16): LUConv input + residual
    down5 = down.reshape(cout, n, do, ho, wo)
    down_p = jnp.pad(down5, ((0, 0), (0, 0), (1, 1), (1, 1), (1, 1)))
    down_store = jnp.pad(down_p.reshape(cout, s),
                         ((0, 0), (g, w_store - g - s)))       # (Cout, w_store)

    # ---- LUConv chain; residual add + relu2 fused into the last kernel -----
    ops = params["ops"]
    assert len(ops) >= 1, "DownTransition in VNet always has >= 1 LUConv"
    k_real = 27 * cout
    k_pad = _round_up(k_real, 128)
    x_store = down_store
    out = None
    for li, (lw, lb, lbn) in enumerate(ops):
        lscale, lbias = _bn_scale_bias(lb, lbn)
        wt = (lw * lscale[:, None, None, None, None]).transpose(0, 2, 3, 4, 1)
        wt = wt.reshape(cout, k_real)
        wt = jnp.pad(wt, ((0, 0), (0, k_pad - k_real))).astype(jnp.bfloat16)
        is_last = li == len(ops) - 1
        out = luconv(x_store, wt, lbias.astype(jnp.float32), mask_store,
                     tap_offsets=tap_offsets, tile=tile, g_blk=g_blk,
                     n_int_blk=n_int_blk,
                     out_dtype=jnp.float32 if is_last else jnp.bfloat16,
                     residual_bf=down_store if is_last else None)
        if not is_last:
            x_store = out           # bf16 store layout -> next layer, no glue

    # ---- unpack store layout -> NCDHW ---------------------------------------
    o5 = out[:, g:g + s].reshape(cout, n, dp, hp, wp)
    o5 = o5[:, :, 1:1 + do, 1:1 + ho, 1:1 + wo]
    return jnp.transpose(o5, (1, 0, 2, 3, 4))


# ---------------------------------------------------------------------------
# Pure-JAX reference (lax.conv, f32) for verification
# ---------------------------------------------------------------------------
def _elu(x):
    return jnp.where(x > 0, x, jnp.exp(jnp.minimum(x, 0.0)) - 1.0)


def _ref_forward(x_ncdhw, params):
    dn = ("NDHWC", "DHWIO", "NDHWC")
    x = jnp.transpose(x_ncdhw, (0, 2, 3, 4, 1)).astype(jnp.float32)
    w = jnp.transpose(params["down_w"], (2, 3, 4, 1, 0))
    y = jax.lax.conv_general_dilated(x, w, (2, 2, 2), "VALID",
                                     dimension_numbers=dn) + params["down_b"]
    gma, bta, mu, vr = params["bn1"]
    down = _elu((y - mu) / jnp.sqrt(vr + EPS) * gma + bta)
    out = down
    for (lw, lb, (gma, bta, mu, vr)) in params["ops"]:
        wk = jnp.transpose(lw, (2, 3, 4, 1, 0))
        y = jax.lax.conv_general_dilated(out, wk, (1, 1, 1), [(1, 1)] * 3,
                                         dimension_numbers=dn) + lb
        out = _elu((y - mu) / jnp.sqrt(vr + EPS) * gma + bta)
    res = _elu(out + down)
    return jnp.transpose(res, (0, 4, 1, 2, 3))


# ---------------------------------------------------------------------------
# Parameter init + driver
# ---------------------------------------------------------------------------
def init_params(key, in_chans, n_convs):
    out_chans = 2 * in_chans

    def bn_params(k):
        k1, k2, k3, k4 = jax.random.split(k, 4)
        gamma = jax.random.uniform(k1, (out_chans,), jnp.float32, 0.9, 1.1)
        beta = 0.1 * jax.random.normal(k2, (out_chans,), jnp.float32)
        mean = 0.1 * jax.random.normal(k3, (out_chans,), jnp.float32)
        var = jax.random.uniform(k4, (out_chans,), jnp.float32, 0.8, 1.2)
        return (gamma, beta, mean, var)

    keys = jax.random.split(key, 3 + 2 * n_convs)
    params = {
        "down_w": 0.2 * jax.random.normal(
            keys[0], (out_chans, in_chans, 2, 2, 2), jnp.float32),
        "down_b": 0.1 * jax.random.normal(keys[1], (out_chans,), jnp.float32),
        "bn1": bn_params(keys[2]),
        "ops": [],
    }
    for i in range(n_convs):
        kw, kb = jax.random.split(keys[3 + i], 2)
        lw = 0.06 * jax.random.normal(kw, (out_chans, out_chans, 3, 3, 3),
                                      jnp.float32)
        lb = 0.1 * jax.random.normal(kb, (out_chans,), jnp.float32)
        params["ops"].append((lw, lb, bn_params(keys[3 + n_convs + i])))
    return params


if __name__ == "__main__":
    IN_CHANS, N_CONVS = 4, 2
    N, D, H, W = 2, 8, 8, 8

    root = jax.random.PRNGKey(0)
    kx, kp = jax.random.split(root)
    x = jax.random.normal(kx, (N, IN_CHANS, D, H, W), jnp.float32)  # NCDHW
    params = init_params(kp, IN_CHANS, N_CONVS)

    out = jax.block_until_ready(down_transition_forward(x, params))
    ref = jax.block_until_ready(_ref_forward(x, params))

    assert out.shape == (N, 2 * IN_CHANS, D // 2, H // 2, W // 2), out.shape
    err = float(jnp.max(jnp.abs(out - ref)))
    scale = float(jnp.max(jnp.abs(ref))) + 1e-6
    rel = err / scale
    # bf16 GEMM operands / bf16 inter-layer activations (f32 accumulation):
    # tolerance relaxed vs the f32 reference.
    if not np.isfinite(err) or rel > 0.06:
        raise AssertionError(
            f"Pallas output mismatch: max|err|={err:.4f} rel-to-max={rel:.4f}")
    print("KERNEL_OK")
</pallas_src>

<mosaic_0001>
module attributes {stable_mosaic.version = 11 : i64} {
  func.func @_gemm_bias_elu_kernel(%arg0: i32, %arg1: memref<8x32xbf16, #tpu.memory_space<vmem>>, %arg2: memref<32x128xbf16, #tpu.memory_space<vmem>>, %arg3: memref<8x1xf32, #tpu.memory_space<vmem>>, %arg4: memref<8x128xbf16, #tpu.memory_space<vmem>>) attributes {dimension_semantics = [#tpu.dimension_semantics<parallel>], iteration_bounds = array<i64: 1>, scalar_prefetch = 0 : i64, scratch_operands = 0 : i64, tpu.core_type = #tpu.core_type<tc>, window_params = [{pipeline_mode = #tpu.pipeline_mode<synchronous>, transform_indices = @transform_0, window_bounds = array<i64: 8, 32>}, {transform_indices = @transform_1, window_bounds = array<i64: 32, 128>}, {pipeline_mode = #tpu.pipeline_mode<synchronous>, transform_indices = @transform_2, window_bounds = array<i64: 8, 1>}, {transform_indices = @transform_3, window_bounds = array<i64: 8, 128>}]} {
    %c0 = arith.constant 0 : index
    %c0_0 = arith.constant 0 : index
    %0 = vector.load %arg1[%c0, %c0_0] : memref<8x32xbf16, #tpu.memory_space<vmem>>, vector<8x32xbf16>
    %c0_1 = arith.constant 0 : index
    %c0_2 = arith.constant 0 : index
    %1 = vector.load %arg2[%c0_1, %c0_2] : memref<32x128xbf16, #tpu.memory_space<vmem>>, vector<32x128xbf16>
    %cst = arith.constant dense<0.000000e+00> : vector<8x128xf32>
    %2 = tpu.matmul %0, %1, %cst {dimension_numbers = #tpu.dot_dimension_numbers<[1], [0], [0], [1], [0, 0, 1, 1], [], []>} : vector<8x32xbf16>, vector<32x128xbf16>, vector<8x128xf32> -> vector<8x128xf32>
    %c0_3 = arith.constant 0 : index
    %c0_4 = arith.constant 0 : index
    %3 = vector.load %arg3[%c0_3, %c0_4] : memref<8x1xf32, #tpu.memory_space<vmem>>, vector<8x1xf32>
    %4 = vector.broadcast %3 : vector<8x1xf32> to vector<8x128xf32>
    %5 = arith.addf %2, %4 : vector<8x128xf32>
    %cst_5 = arith.constant 0.000000e+00 : f32
    %6 = vector.broadcast %cst_5 : f32 to vector<8x128xf32>
    %7 = arith.cmpf ogt, %5, %6 : vector<8x128xf32>
    %8 = math.exp %5 : vector<8x128xf32>
    %cst_6 = arith.constant 1.000000e+00 : f32
    %9 = vector.broadcast %cst_6 : f32 to vector<8x128xf32>
    %10 = arith.subf %8, %9 : vector<8x128xf32>
    %11 = arith.select %7, %5, %10 : vector<8x128xi1>, vector<8x128xf32>
    %12 = arith.truncf %11 : vector<8x128xf32> to vector<8x128xbf16>
    %c0_7 = arith.constant 0 : index
    %c0_8 = arith.constant 0 : index
    %13 = vector.load %arg4[%c0_7, %c0_8] : memref<8x128xbf16, #tpu.memory_space<vmem>>, vector<8x128xbf16>
    tpu.vector_store %arg4[%c0_7, %c0_8], %12 {strides = array<i32>} : memref<8x128xbf16, #tpu.memory_space<vmem>>, vector<8x128xbf16>,
    return
  }
  func.func @transform_0(%arg0: i32) -> (i32, i32) {
    %c0_i32 = arith.constant 0 : i32
    %c0_i32_0 = arith.constant 0 : i32
    %c0_i32_1 = arith.constant 0 : i32
    return %c0_i32, %c0_i32_0 : i32, i32
  }
  func.func @transform_1(%arg0: i32) -> (i32, i32) {
    %c0_i32 = arith.constant 0 : i32
    %c0_i32_0 = arith.constant 0 : i32
    return %c0_i32, %arg0 : i32, i32
  }
  func.func @transform_2(%arg0: i32) -> (i32, i32) {
    %c0_i32 = arith.constant 0 : i32
    %c0_i32_0 = arith.constant 0 : i32
    %c0_i32_1 = arith.constant 0 : i32
    return %c0_i32, %c0_i32_0 : i32, i32
  }
  func.func @transform_3(%arg0: i32) -> (i32, i32) {
    %c0_i32 = arith.constant 0 : i32
    %c0_i32_0 = arith.constant 0 : i32
    return %c0_i32, %arg0 : i32, i32
  }
}

module attributes {stable_mosaic.version = 11 : i64} {
  func.func @kernel(%arg0: i32, %arg1: memref<8x512xbf16, #tpu.memory_space<vmem>>, %arg2: memref<8x512xbf16, #tpu.memory_space<vmem>>, %arg3: memref<8x512xbf16, #tpu.memory_space<vmem>>, %arg4: memref<8x256xbf16, #tpu.memory_space<vmem>>, %arg5: memref<8x1xf32, #tpu.memory_space<vmem>>, %arg6: memref<1x512xf32, #tpu.memory_space<vmem>>, %arg7: memref<8x512xbf16, #tpu.memory_space<vmem>>, %arg8: memref<8x512xf32, #tpu.memory_space<vmem>>, %arg9: memref<256x512xf32, #tpu.memory_space<vmem>>) attributes {dimension_semantics = [#tpu.dimension_semantics<parallel>], iteration_bounds = array<i64: 3>, scalar_prefetch = 0 : i64, scratch_operands = 1 : i64, tpu.core_type = #tpu.core_type<tc>, window_params = [{transform_indices = @transform_0, window_bounds = array<i64: 8, 512>}, {transform_indices = @transform_1, window_bounds = array<i64: 8, 512>}, {transform_indices = @transform_2, window_bounds = array<i64: 8, 512>}, {pipeline_mode = #tpu.pipeline_mode<synchronous>, transform_indices = @transform_3, window_bounds = array<i64: 8, 256>}, {pipeline_mode = #tpu.pipeline_mode<synchronous>, transform_indices = @transform_4, window_bounds = array<i64: 8, 1>}, {transform_indices = @transform_5, window_bounds = array<i64: 1, 512>}, {transform_indices = @transform_6, window_bounds = array<i64: 8, 512>}, {transform_indices = @transform_7, window_bounds = array<i64: 8, 512>}]} {
    %c1_i32 = arith.constant 1 : i32
    %0 = arith.cmpi sge, %arg0, %c1_i32 : i32
    %c2_i32 = arith.constant 2 : i32
    %1 = arith.cmpi slt, %arg0, %c2_i32 : i32
    %2 = arith.andi %0, %1 : i1
    %true = arith.constant true
    %3 = arith.xori %2, %true : i1
    %4 = arith.extui %3 : i1 to i32
    %c0_i32 = arith.constant 0 : i32
    %5 = arith.cmpi ne, %4, %c0_i32 : i32
    scf.if %5 {
      %cst = arith.constant 0.000000e+00 : f32
      %8 = vector.broadcast %cst : f32 to vector<8x512xf32>
      %c0 = arith.constant 0 : index
      %c0_1 = arith.constant 0 : index
      %9 = vector.load %arg8[%c0, %c0_1] : memref<8x512xf32, #tpu.memory_space<vmem>>, vector<8x512xf32>
      tpu.vector_store %arg8[%c0, %c0_1], %8 {strides = array<i32>} : memref<8x512xf32, #tpu.memory_space<vmem>>, vector<8x512xf32>,
    } else {
    }
    %6 = arith.extui %2 : i1 to i32
    %c0_i32_0 = arith.constant 0 : i32
    %7 = arith.cmpi ne, %6, %c0_i32_0 : i32
    scf.if %7 {
      %c0 = arith.constant 0 : index
      %c0_1 = arith.constant 0 : index
      %8 = vector.load %arg1[%c0, %c0_1] : memref<8x512xbf16, #tpu.memory_space<vmem>>, vector<8x512xbf16>
      %c0_2 = arith.constant 0 : index
      %c0_3 = arith.constant 0 : index
      %9 = vector.load %arg2[%c0_2, %c0_3] : memref<8x512xbf16, #tpu.memory_space<vmem>>, vector<8x512xbf16>
      %c0_4 = arith.constant 0 : index
      %c0_5 = arith.constant 0 : index
      %10 = vector.load %arg3[%c0_4, %c0_5] : memref<8x512xbf16, #tpu.memory_space<vmem>>, vector<8x512xbf16>
      %11 = tpu.concatenate %8, %9, %10 in 1 : vector<8x512xbf16>, vector<8x512xbf16>, vector<8x512xbf16> -> vector<8x1536xbf16>
      %12 = arith.extf %11 : vector<8x1536xbf16> to vector<8x1536xf32>
      %13 = vector.extract_strided_slice %12 {offsets = [0, 469], sizes = [8, 512], strides = [1, 1]} : vector<8x1536xf32> to vector<8x512xf32>
      %c0_6 = arith.constant 0 : index
      %c0_7 = arith.constant 0 : index
      %14 = vector.load %arg9[%c0_6, %c0_7] : memref<256x512xf32, #tpu.memory_space<vmem>>, vector<8x512xf32>
      tpu.vector_store %arg9[%c0_6, %c0_7], %13 {strides = array<i32>} : memref<256x512xf32, #tpu.memory_space<vmem>>, vector<8x512xf32>,
      %15 = vector.extract_strided_slice %12 {offsets = [0, 470], sizes = [8, 512], strides = [1, 1]} : vector<8x1536xf32> to vector<8x512xf32>
      %c8 = arith.constant 8 : index
      %c0_8 = arith.constant 0 : index
      %16 = vector.load %arg9[%c8, %c0_8] : memref<256x512xf32, #tpu.memory_space<vmem>>, vector<8x512xf32>
      tpu.vector_store %arg9[%c8, %c0_8], %15 {strides = array<i32>} : memref<256x512xf32, #tpu.memory_space<vmem>>, vector<8x512xf32>,
      %17 = vector.extract_strided_slice %12 {offsets = [0, 471], sizes = [8, 512], strides = [1, 1]} : vector<8x1536xf32> to vector<8x512xf32>
      %c16 = arith.constant 16 : index
      %c0_9 = arith.constant 0 : index
      %18 = vector.load %arg9[%c16, %c0_9] : memref<256x512xf32, #tpu.memory_space<vmem>>, vector<8x512xf32>
      tpu.vector_store %arg9[%c16, %c0_9], %17 {strides = array<i32>} : memref<256x512xf32, #tpu.memory_space<vmem>>, vector<8x512xf32>,
      %19 = vector.extract_strided_slice %12 {offsets = [0, 475], sizes = [8, 512], strides = [1, 1]} : vector<8x1536xf32> to vector<8x512xf32>
      %c24 = arith.constant 24 : index
      %c0_10 = arith.constant 0 : index
      %20 = vector.load %arg9[%c24, %c0_10] : memref<256x512xf32, #tpu.memory_space<vmem>>, vector<8x512xf32>
      tpu.vector_store %arg9[%c24, %c0_10], %19 {strides = array<i32>} : memref<256x512xf32, #tpu.memory_space<vmem>>, vector<8x512xf32>,
      %21 = vector.extract_strided_slice %12 {offsets = [0, 476], sizes = [8, 512], strides = [1, 1]} : vector<8x1536xf32> to vector<8x512xf32>
      %c32 = arith.constant 32 : index
      %c0_11 = arith.constant 0 : index
      %22 = vector.load %arg9[%c32, %c0_11] : memref<256x512xf32, #tpu.memory_space<vmem>>, vector<8x512xf32>
      tpu.vector_store %arg9[%c32, %c0_11], %21 {strides = array<i32>} : memref<256x512xf32, #tpu.memory_space<vmem>>, vector<8x512xf32>,
      %23 = vector.extract_strided_slice %12 {offsets = [0, 477], sizes = [8, 512], strides = [1, 1]} : vector<8x1536xf32> to vector<8x512xf32>
      %c40 = arith.constant 40 : index
      %c0_12 = arith.constant 0 : index
      %24 = vector.load %arg9[%c40, %c0_12] : memref<256x512xf32, #tpu.memory_space<vmem>>, vector<8x512xf32>
      tpu.vector_store %arg9[%c40, %c0_12], %23 {strides = array<i32>} : memref<256x512xf32, #tpu.memory_space<vmem>>, vector<8x512xf32>,
      %25 = vector.extract_strided_slice %12 {offsets = [0, 481], sizes = [8, 512], strides = [1, 1]} : vector<8x1536xf32> to vector<8x512xf32>
      %c48 = arith.constant 48 : index
      %c0_13 = arith.constant 0 : index
      %26 = vector.load %arg9[%c48, %c0_13] : memref<256x512xf32, #tpu.memory_space<vmem>>, vector<8x512xf32>
      tpu.vector_store %arg9[%c48, %c0_13], %25 {strides = array<i32>} : memref<256x512xf32, #tpu.memory_space<vmem>>, vector<8x512xf32>,
      %27 = vector.extract_strided_slice %12 {offsets = [0, 482], sizes = [8, 512], strides = [1, 1]} : vector<8x1536xf32> to vector<8x512xf32>
      %c56 = arith.constant 56 : index
      %c0_14 = arith.constant 0 : index
      %28 = vector.load %arg9[%c56, %c0_14] : memref<256x512xf32, #tpu.memory_space<vmem>>, vector<8x512xf32>
      tpu.vector_store %arg9[%c56, %c0_14], %27 {strides = array<i32>} : memref<256x512xf32, #tpu.memory_space<vmem>>, vector<8x512xf32>,
      %29 = vector.extract_strided_slice %12 {offsets = [0, 483], sizes = [8, 512], strides = [1, 1]} : vector<8x1536xf32> to vector<8x512xf32>
      %c64 = arith.constant 64 : index
      %c0_15 = arith.constant 0 : index
      %30 = vector.load %arg9[%c64, %c0_15] : memref<256x512xf32, #tpu.memory_space<vmem>>, vector<8x512xf32>
      tpu.vector_store %arg9[%c64, %c0_15], %29 {strides = array<i32>} : memref<256x512xf32, #tpu.memory_space<vmem>>, vector<8x512xf32>,
      %31 = vector.extract_strided_slice %12 {offsets = [0, 505], sizes = [8, 512], strides = [1, 1]} : vector<8x1536xf32> to vector<8x512xf32>
      %c72 = arith.constant 72 : index
      %c0_16 = arith.constant 0 : index
      %32 = vector.load %arg9[%c72, %c0_16] : memref<256x512xf32, #tpu.memory_space<vmem>>, vector<8x512xf32>
      tpu.vector_store %arg9[%c72, %c0_16], %31 {strides = array<i32>} : memref<256x512xf32, #tpu.memory_space<vmem>>, vector<8x512xf32>,
      %33 = vector.extract_strided_slice %12 {offsets = [0, 506], sizes = [8, 512], strides = [1, 1]} : vector<8x1536xf32> to vector<8x512xf32>
      %c80 = arith.constant 80 : index
      %c0_17 = arith.constant 0 : index
      %34 = vector.load %arg9[%c80, %c0_17] : memref<256x512xf32, #tpu.memory_space<vmem>>, vector<8x512xf32>
      tpu.vector_store %arg9[%c80, %c0_17], %33 {strides = array<i32>} : memref<256x512xf32, #tpu.memory_space<vmem>>, vector<8x512xf32>,
      %35 = vector.extract_strided_slice %12 {offsets = [0, 507], sizes = [8, 512], strides = [1, 1]} : vector<8x1536xf32> to vector<8x512xf32>
      %c88 = arith.constant 88 : index
      %c0_18 = arith.constant 0 : index
      %36 = vector.load %arg9[%c88, %c0_18] : memref<256x512xf32, #tpu.memory_space<vmem>>, vector<8x512xf32>
      tpu.vector_store %arg9[%c88, %c0_18], %35 {strides = array<i32>} : memref<256x512xf32, #tpu.memory_space<vmem>>, vector<8x512xf32>,
      %37 = vector.extract_strided_slice %12 {offsets = [0, 511], sizes = [8, 512], strides = [1, 1]} : vector<8x1536xf32> to vector<8x512xf32>
      %c96 = arith.constant 96 : index
      %c0_19 = arith.constant 0 : index
      %38 = vector.load %arg9[%c96, %c0_19] : memref<256x512xf32, #tpu.memory_space<vmem>>, vector<8x512xf32>
      tpu.vector_store %arg9[%c96, %c0_19], %37 {strides = array<i32>} : memref<256x512xf32, #tpu.memory_space<vmem>>, vector<8x512xf32>,
      %39 = vector.extract_strided_slice %12 {offsets = [0, 512], sizes = [8, 512], strides = [1, 1]} : vector<8x1536xf32> to vector<8x512xf32>
      %c104 = arith.constant 104 : index
      %c0_20 = arith.constant 0 : index
      %40 = vector.load %arg9[%c104, %c0_20] : memref<256x512xf32, #tpu.memory_space<vmem>>, vector<8x512xf32>
      tpu.vector_store %arg9[%c104, %c0_20], %39 {strides = array<i32>} : memref<256x512xf32, #tpu.memory_space<vmem>>, vector<8x512xf32>,
      %41 = vector.extract_strided_slice %12 {offsets = [0, 513], sizes = [8, 512], strides = [1, 1]} : vector<8x1536xf32> to vector<8x512xf32>
      %c112 = arith.constant 112 : index
      %c0_21 = arith.constant 0 : index
      %42 = vector.load %arg9[%c112, %c0_21] : memref<256x512xf32, #tpu.memory_space<vmem>>, vector<8x512xf32>
      tpu.vector_store %arg9[%c112, %c0_21], %41 {strides = array<i32>} : memref<256x512xf32, #tpu.memory_space<vmem>>, vector<8x512xf32>,
      %43 = vector.extract_strided_slice %12 {offsets = [0, 517], sizes = [8, 512], strides = [1, 1]} : vector<8x1536xf32> to vector<8x512xf32>
      %c120 = arith.constant 120 : index
      %c0_22 = arith.constant 0 : index
      %44 = vector.load %arg9[%c120, %c0_22] : memref<256x512xf32, #tpu.memory_space<vmem>>, vector<8x512xf32>
      tpu.vector_store %arg9[%c120, %c0_22], %43 {strides = array<i32>} : memref<256x512xf32, #tpu.memory_space<vmem>>, vector<8x512xf32>,
      %45 = vector.extract_strided_slice %12 {offsets = [0, 518], sizes = [8, 512], strides = [1, 1]} : vector<8x1536xf32> to vector<8x512xf32>
      %c128 = arith.constant 128 : index
      %c0_23 = arith.constant 0 : index
      %46 = vector.load %arg9[%c128, %c0_23] : memref<256x512xf32, #tpu.memory_space<vmem>>, vector<8x512xf32>
      tpu.vector_store %arg9[%c128, %c0_23], %45 {strides = array<i32>} : memref<256x512xf32, #tpu.memory_space<vmem>>, vector<8x512xf32>,
      %47 = vector.extract_strided_slice %12 {offsets = [0, 519], sizes = [8, 512], strides = [1, 1]} : vector<8x1536xf32> to vector<8x512xf32>
      %c136 = arith.constant 136 : index
      %c0_24 = arith.constant 0 : index
      %48 = vector.load %arg9[%c136, %c0_24] : memref<256x512xf32, #tpu.memory_space<vmem>>, vector<8x512xf32>
      tpu.vector_store %arg9[%c136, %c0_24], %47 {strides = array<i32>} : memref<256x512xf32, #tpu.memory_space<vmem>>, vector<8x512xf32>,
      %49 = vector.extract_strided_slice %12 {offsets = [0, 541], sizes = [8, 512], strides = [1, 1]} : vector<8x1536xf32> to vector<8x512xf32>
      %c144 = arith.constant 144 : index
      %c0_25 = arith.constant 0 : index
      %50 = vector.load %arg9[%c144, %c0_25] : memref<256x512xf32, #tpu.memory_space<vmem>>, vector<8x512xf32>
      tpu.vector_store %arg9[%c144, %c0_25], %49 {strides = array<i32>} : memref<256x512xf32, #tpu.memory_space<vmem>>, vector<8x512xf32>,
      %51 = vector.extract_strided_slice %12 {offsets = [0, 542], sizes = [8, 512], strides = [1, 1]} : vector<8x1536xf32> to vector<8x512xf32>
      %c152 = arith.constant 152 : index
      %c0_26 = arith.constant 0 : index
      %52 = vector.load %arg9[%c152, %c0_26] : memref<256x512xf32, #tpu.memory_space<vmem>>, vector<8x512xf32>
      tpu.vector_store %arg9[%c152, %c0_26], %51 {strides = array<i32>} : memref<256x512xf32, #tpu.memory_space<vmem>>, vector<8x512xf32>,
      %53 = vector.extract_strided_slice %12 {offsets = [0, 543], sizes = [8, 512], strides = [1, 1]} : vector<8x1536xf32> to vector<8x512xf32>
      %c160 = arith.constant 160 : index
      %c0_27 = arith.constant 0 : index
      %54 = vector.load %arg9[%c160, %c0_27] : memref<256x512xf32, #tpu.memory_space<vmem>>, vector<8x512xf32>
      tpu.vector_store %arg9[%c160, %c0_27], %53 {strides = array<i32>} : memref<256x512xf32, #tpu.memory_space<vmem>>, vector<8x512xf32>,
      %55 = vector.extract_strided_slice %12 {offsets = [0, 547], sizes = [8, 512], strides = [1, 1]} : vector<8x1536xf32> to vector<8x512xf32>
      %c168 = arith.constant 168 : index
      %c0_28 = arith.constant 0 : index
      %56 = vector.load %arg9[%c168, %c0_28] : memref<256x512xf32, #tpu.memory_space<vmem>>, vector<8x512xf32>
      tpu.vector_store %arg9[%c168, %c0_28], %55 {strides = array<i32>} : memref<256x512xf32, #tpu.memory_space<vmem>>, vector<8x512xf32>,
      %57 = vector.extract_strided_slice %12 {offsets = [0, 548], sizes = [8, 512], strides = [1, 1]} : vector<8x1536xf32> to vector<8x512xf32>
      %c176 = arith.constant 176 : index
      %c0_29 = arith.constant 0 : index
      %58 = vector.load %arg9[%c176, %c0_29] : memref<256x512xf32, #tpu.memory_space<vmem>>, vector<8x512xf32>
      tpu.vector_store %arg9[%c176, %c0_29], %57 {strides = array<i32>} : memref<256x512xf32, #tpu.memory_space<vmem>>, vector<8x512xf32>,
      %59 = vector.extract_strided_slice %12 {offsets = [0, 549], sizes = [8, 512], strides = [1, 1]} : vector<8x1536xf32> to vector<8x512xf32>
      %c184 = arith.constant 184 : index
      %c0_30 = arith.constant 0 : index
      %60 = vector.load %arg9[%c184, %c0_30] : memref<256x512xf32, #tpu.memory_space<vmem>>, vector<8x512xf32>
      tpu.vector_store %arg9[%c184, %c0_30], %59 {strides = array<i32>} : memref<256x512xf32, #tpu.memory_space<vmem>>, vector<8x512xf32>,
      %61 = vector.extract_strided_slice %12 {offsets = [0, 553], sizes = [8, 512], strides = [1, 1]} : vector<8x1536xf32> to vector<8x512xf32>
      %c192 = arith.constant 192 : index
      %c0_31 = arith.constant 0 : index
      %62 = vector.load %arg9[%c192, %c0_31] : memref<256x512xf32, #tpu.memory_space<vmem>>, vector<8x512xf32>
      tpu.vector_store %arg9[%c192, %c0_31], %61 {strides = array<i32>} : memref<256x512xf32, #tpu.memory_space<vmem>>, vector<8x512xf32>,
      %63 = vector.extract_strided_slice %12 {offsets = [0, 554], sizes = [8, 512], strides = [1, 1]} : vector<8x1536xf32> to vector<8x512xf32>
      %c200 = arith.constant 200 : index
      %c0_32 = arith.constant 0 : index
      %64 = vector.load %arg9[%c200, %c0_32] : memref<256x512xf32, #tpu.memory_space<vmem>>, vector<8x512xf32>
      tpu.vector_store %arg9[%c200, %c0_32], %63 {strides = array<i32>} : memref<256x512xf32, #tpu.memory_space<vmem>>, vector<8x512xf32>,
      %65 = vector.extract_strided_slice %12 {offsets = [0, 555], sizes = [8, 512], strides = [1, 1]} : vector<8x1536xf32> to vector<8x512xf32>
      %c208 = arith.constant 208 : index
      %c0_33 = arith.constant 0 : index
      %66 = vector.load %arg9[%c208, %c0_33] : memref<256x512xf32, #tpu.memory_space<vmem>>, vector<8x512xf32>
      tpu.vector_store %arg9[%c208, %c0_33], %65 {strides = array<i32>} : memref<256x512xf32, #tpu.memory_space<vmem>>, vector<8x512xf32>,
      %cst = arith.constant 0.000000e+00 : f32
      %67 = vector.broadcast %cst : f32 to vector<40x512xf32>
      %c216 = arith.constant 216 : index
      %c0_34 = arith.constant 0 : index
      %68 = vector.load %arg9[%c216, %c0_34] : memref<256x512xf32, #tpu.memory_space<vmem>>, vector<40x512xf32>
      tpu.vector_store %arg9[%c216, %c0_34], %67 {strides = array<i32>} : memref<256x512xf32, #tpu.memory_space<vmem>>, vector<40x512xf32>,
      %c0_35 = arith.constant 0 : index
      %c0_36 = arith.constant 0 : index
      %69 = vector.load %arg9[%c0_35, %c0_36] : memref<256x512xf32, #tpu.memory_space<vmem>>, vector<256x512xf32>
      %70 = arith.truncf %69 : vector<256x512xf32> to vector<256x512xbf16>
      %c0_37 = arith.constant 0 : index
      %c0_38 = arith.constant 0 : index
      %71 = vector.load %arg4[%c0_37, %c0_38] : memref<8x256xbf16, #tpu.memory_space<vmem>>, vector<8x256xbf16>
      %cst_39 = arith.constant dense<0.000000e+00> : vector<8x512xf32>
      %72 = tpu.matmul %71, %70, %cst_39 {dimension_numbers = #tpu.dot_dimension_numbers<[1], [0], [0], [1], [0, 0, 1, 1], [], []>} : vector<8x256xbf16>, vector<256x512xbf16>, vector<8x512xf32> -> vector<8x512xf32>
      %c0_40 = arith.constant 0 : index
      %c0_41 = arith.constant 0 : index
      %73 = vector.load %arg5[%c0_40, %c0_41] : memref<8x1xf32, #tpu.memory_space<vmem>>, vector<8x1xf32>
      %74 = vector.broadcast %73 : vector<8x1xf32> to vector<8x512xf32>
      %75 = arith.addf %72, %74 : vector<8x512xf32>
      %cst_42 = arith.constant 0.000000e+00 : f32
      %76 = vector.broadcast %cst_42 : f32 to vector<8x512xf32>
      %77 = arith.cmpf ogt, %75, %76 : vector<8x512xf32>
      %78 = math.exp %75 : vector<8x512xf32>
      %cst_43 = arith.constant 1.000000e+00 : f32
      %79 = vector.broadcast %cst_43 : f32 to vector<8x512xf32>
      %80 = arith.subf %78, %79 : vector<8x512xf32>
      %81 = arith.select %77, %75, %80 : vector<8x512xi1>, vector<8x512xf32>
      %c0_44 = arith.constant 0 : index
      %c0_45 = arith.constant 0 : index
      %82 = vector.load %arg7[%c0_44, %c0_45] : memref<8x512xbf16, #tpu.memory_space<vmem>>, vector<8x512xbf16>
      %83 = arith.extf %82 : vector<8x512xbf16> to vector<8x512xf32>
      %84 = arith.addf %81, %83 : vector<8x512xf32>
      %cst_46 = arith.constant 0.000000e+00 : f32
      %85 = vector.broadcast %cst_46 : f32 to vector<8x512xf32>
      %86 = arith.cmpf ogt, %84, %85 : vector<8x512xf32>
      %87 = math.exp %84 : vector<8x512xf32>
      %cst_47 = arith.constant 1.000000e+00 : f32
      %88 = vector.broadcast %cst_47 : f32 to vector<8x512xf32>
      %89 = arith.subf %87, %88 : vector<8x512xf32>
      %90 = arith.select %86, %84, %89 : vector<8x512xi1>, vector<8x512xf32>
      %c0_48 = arith.constant 0 : index
      %c0_49 = arith.constant 0 : index
      %91 = vector.load %arg6[%c0_48, %c0_49] : memref<1x512xf32, #tpu.memory_space<vmem>>, vector<1x512xf32>
      %92 = vector.broadcast %91 : vector<1x512xf32> to vector<8x512xf32>
      %93 = arith.mulf %90, %92 : vector<8x512xf32>
      %c0_50 = arith.constant 0 : index
      %c0_51 = arith.constant 0 : index
      %94 = vector.load %arg8[%c0_50, %c0_51] : memref<8x512xf32, #tpu.memory_space<vmem>>, vector<8x512xf32>
      tpu.vector_store %arg8[%c0_50, %c0_51], %93 {strides = array<i32>} : memref<8x512xf32, #tpu.memory_space<vmem>>, vector<8x512xf32>,
    } else {
    }
    return
  }
  func.func @transform_0(%arg0: i32) -> (i32, i32) {
    %c1_i32 = arith.constant 1 : i32
    %0 = arith.subi %arg0, %c1_i32 : i32
    %c0_i32 = arith.constant 0 : i32
    %1 = arith.maxsi %0, %c0_i32 : i32
    %c0_i32_0 = arith.constant 0 : i32
    %c0_i32_1 = arith.constant 0 : i32
    return %c0_i32_0, %1 : i32, i32
  }
  func.func @transform_1(%arg0: i32) -> (i32, i32) {
    %c0_i32 = arith.constant 0 : i32
    %c0_i32_0 = arith.constant 0 : i32
    return %c0_i32, %arg0 : i32, i32
  }
  func.func @transform_2(%arg0: i32) -> (i32, i32) {
    %c1_i32 = arith.constant 1 : i32
    %0 = arith.addi %arg0, %c1_i32 : i32
    %c2_i32 = arith.constant 2 : i32
    %1 = arith.minsi %0, %c2_i32 : i32
    %c0_i32 = arith.constant 0 : i32
    %c0_i32_0 = arith.constant 0 : i32
    return %c0_i32, %1 : i32, i32
  }
  func.func @transform_3(%arg0: i32) -> (i32, i32) {
    %c0_i32 = arith.constant 0 : i32
    %c0_i32_0 = arith.constant 0 : i32
    %c0_i32_1 = arith.constant 0 : i32
    return %c0_i32, %c0_i32_0 : i32, i32
  }
  func.func @transform_4(%arg0: i32) -> (i32, i32) {
    %c0_i32 = arith.constant 0 : i32
    %c0_i32_0 = arith.constant 0 : i32
    %c0_i32_1 = arith.constant 0 : i32
    return %c0_i32, %c0_i32_0 : i32, i32
  }
  func.func @transform_5(%arg0: i32) -> (i32, i32) {
    %c0_i32 = arith.constant 0 : i32
    %c0_i32_0 = arith.constant 0 : i32
    return %c0_i32, %arg0 : i32, i32
  }
  func.func @transform_6(%arg0: i32) -> (i32, i32) {
    %c0_i32 = arith.constant 0 : i32
    %c0_i32_0 = arith.constant 0 : i32
    return %c0_i32, %arg0 : i32, i32
  }
  func.func @transform_7(%arg0: i32) -> (i32, i32) {
    %c0_i32 = arith.constant 0 : i32
    %c0_i32_0 = arith.constant 0 : i32
    return %c0_i32, %arg0 : i32, i32
  }
}

module attributes {stable_mosaic.version = 11 : i64} {
  func.func @kernel(%arg0: i32, %arg1: memref<8x512xbf16, #tpu.memory_space<vmem>>, %arg2: memref<8x512xbf16, #tpu.memory_space<vmem>>, %arg3: memref<8x512xbf16, #tpu.memory_space<vmem>>, %arg4: memref<8x256xbf16, #tpu.memory_space<vmem>>, %arg5: memref<8x1xf32, #tpu.memory_space<vmem>>, %arg6: memref<1x512xf32, #tpu.memory_space<vmem>>, %arg7: memref<8x512xbf16, #tpu.memory_space<vmem>>, %arg8: memref<256x512xf32, #tpu.memory_space<vmem>>) attributes {dimension_semantics = [#tpu.dimension_semantics<parallel>], iteration_bounds = array<i64: 3>, scalar_prefetch = 0 : i64, scratch_operands = 1 : i64, tpu.core_type = #tpu.core_type<tc>, window_params = [{transform_indices = @transform_0, window_bounds = array<i64: 8, 512>}, {transform_indices = @transform_1, window_bounds = array<i64: 8, 512>}, {transform_indices = @transform_2, window_bounds = array<i64: 8, 512>}, {pipeline_mode = #tpu.pipeline_mode<synchronous>, transform_indices = @transform_3, window_bounds = array<i64: 8, 256>}, {pipeline_mode = #tpu.pipeline_mode<synchronous>, transform_indices = @transform_4, window_bounds = array<i64: 8, 1>}, {transform_indices = @transform_5, window_bounds = array<i64: 1, 512>}, {transform_indices = @transform_6, window_bounds = array<i64: 8, 512>}]} {
    %c1_i32 = arith.constant 1 : i32
    %0 = arith.cmpi sge, %arg0, %c1_i32 : i32
    %c2_i32 = arith.constant 2 : i32
    %1 = arith.cmpi slt, %arg0, %c2_i32 : i32
    %2 = arith.andi %0, %1 : i1
    %true = arith.constant true
    %3 = arith.xori %2, %true : i1
    %4 = arith.extui %3 : i1 to i32
    %c0_i32 = arith.constant 0 : i32
    %5 = arith.cmpi ne, %4, %c0_i32 : i32
    scf.if %5 {
      %cst = arith.constant 0.000000e+00 : bf16
      %8 = vector.broadcast %cst : bf16 to vector<8x512xbf16>
      %c0 = arith.constant 0 : index
      %c0_1 = arith.constant 0 : index
      %9 = vector.load %arg7[%c0, %c0_1] : memref<8x512xbf16, #tpu.memory_space<vmem>>, vector<8x512xbf16>
      tpu.vector_store %arg7[%c0, %c0_1], %8 {strides = array<i32>} : memref<8x512xbf16, #tpu.memory_space<vmem>>, vector<8x512xbf16>,
    } else {
    }
    %6 = arith.extui %2 : i1 to i32
    %c0_i32_0 = arith.constant 0 : i32
    %7 = arith.cmpi ne, %6, %c0_i32_0 : i32
    scf.if %7 {
      %c0 = arith.constant 0 : index
      %c0_1 = arith.constant 0 : index
      %8 = vector.load %arg1[%c0, %c0_1] : memref<8x512xbf16, #tpu.memory_space<vmem>>, vector<8x512xbf16>
      %c0_2 = arith.constant 0 : index
      %c0_3 = arith.constant 0 : index
      %9 = vector.load %arg2[%c0_2, %c0_3] : memref<8x512xbf16, #tpu.memory_space<vmem>>, vector<8x512xbf16>
      %c0_4 = arith.constant 0 : index
      %c0_5 = arith.constant 0 : index
      %10 = vector.load %arg3[%c0_4, %c0_5] : memref<8x512xbf16, #tpu.memory_space<vmem>>, vector<8x512xbf16>
      %11 = tpu.concatenate %8, %9, %10 in 1 : vector<8x512xbf16>, vector<8x512xbf16>, vector<8x512xbf16> -> vector<8x1536xbf16>
      %12 = arith.extf %11 : vector<8x1536xbf16> to vector<8x1536xf32>
      %13 = vector.extract_strided_slice %12 {offsets = [0, 469], sizes = [8, 512], strides = [1, 1]} : vector<8x1536xf32> to vector<8x512xf32>
      %c0_6 = arith.constant 0 : index
      %c0_7 = arith.constant 0 : index
      %14 = vector.load %arg8[%c0_6, %c0_7] : memref<256x512xf32, #tpu.memory_space<vmem>>, vector<8x512xf32>
      tpu.vector_store %arg8[%c0_6, %c0_7], %13 {strides = array<i32>} : memref<256x512xf32, #tpu.memory_space<vmem>>, vector<8x512xf32>,
      %15 = vector.extract_strided_slice %12 {offsets = [0, 470], sizes = [8, 512], strides = [1, 1]} : vector<8x1536xf32> to vector<8x512xf32>
      %c8 = arith.constant 8 : index
      %c0_8 = arith.constant 0 : index
      %16 = vector.load %arg8[%c8, %c0_8] : memref<256x512xf32, #tpu.memory_space<vmem>>, vector<8x512xf32>
      tpu.vector_store %arg8[%c8, %c0_8], %15 {strides = array<i32>} : memref<256x512xf32, #tpu.memory_space<vmem>>, vector<8x512xf32>,
      %17 = vector.extract_strided_slice %12 {offsets = [0, 471], sizes = [8, 512], strides = [1, 1]} : vector<8x1536xf32> to vector<8x512xf32>
      %c16 = arith.constant 16 : index
      %c0_9 = arith.constant 0 : index
      %18 = vector.load %arg8[%c16, %c0_9] : memref<256x512xf32, #tpu.memory_space<vmem>>, vector<8x512xf32>
      tpu.vector_store %arg8[%c16, %c0_9], %17 {strides = array<i32>} : memref<256x512xf32, #tpu.memory_space<vmem>>, vector<8x512xf32>,
      %19 = vector.extract_strided_slice %12 {offsets = [0, 475], sizes = [8, 512], strides = [1, 1]} : vector<8x1536xf32> to vector<8x512xf32>
      %c24 = arith.constant 24 : index
      %c0_10 = arith.constant 0 : index
      %20 = vector.load %arg8[%c24, %c0_10] : memref<256x512xf32, #tpu.memory_space<vmem>>, vector<8x512xf32>
      tpu.vector_store %arg8[%c24, %c0_10], %19 {strides = array<i32>} : memref<256x512xf32, #tpu.memory_space<vmem>>, vector<8x512xf32>,
      %21 = vector.extract_strided_slice %12 {offsets = [0, 476], sizes = [8, 512], strides = [1, 1]} : vector<8x1536xf32> to vector<8x512xf32>
      %c32 = arith.constant 32 : index
      %c0_11 = arith.constant 0 : index
      %22 = vector.load %arg8[%c32, %c0_11] : memref<256x512xf32, #tpu.memory_space<vmem>>, vector<8x512xf32>
      tpu.vector_store %arg8[%c32, %c0_11], %21 {strides = array<i32>} : memref<256x512xf32, #tpu.memory_space<vmem>>, vector<8x512xf32>,
      %23 = vector.extract_strided_slice %12 {offsets = [0, 477], sizes = [8, 512], strides = [1, 1]} : vector<8x1536xf32> to vector<8x512xf32>
      %c40 = arith.constant 40 : index
      %c0_12 = arith.constant 0 : index
      %24 = vector.load %arg8[%c40, %c0_12] : memref<256x512xf32, #tpu.memory_space<vmem>>, vector<8x512xf32>
      tpu.vector_store %arg8[%c40, %c0_12], %23 {strides = array<i32>} : memref<256x512xf32, #tpu.memory_space<vmem>>, vector<8x512xf32>,
      %25 = vector.extract_strided_slice %12 {offsets = [0, 481], sizes = [8, 512], strides = [1, 1]} : vector<8x1536xf32> to vector<8x512xf32>
      %c48 = arith.constant 48 : index
      %c0_13 = arith.constant 0 : index
      %26 = vector.load %arg8[%c48, %c0_13] : memref<256x512xf32, #tpu.memory_space<vmem>>, vector<8x512xf32>
      tpu.vector_store %arg8[%c48, %c0_13], %25 {strides = array<i32>} : memref<256x512xf32, #tpu.memory_space<vmem>>, vector<8x512xf32>,
      %27 = vector.extract_strided_slice %12 {offsets = [0, 482], sizes = [8, 512], strides = [1, 1]} : vector<8x1536xf32> to vector<8x512xf32>
      %c56 = arith.constant 56 : index
      %c0_14 = arith.constant 0 : index
      %28 = vector.load %arg8[%c56, %c0_14] : memref<256x512xf32, #tpu.memory_space<vmem>>, vector<8x512xf32>
      tpu.vector_store %arg8[%c56, %c0_14], %27 {strides = array<i32>} : memref<256x512xf32, #tpu.memory_space<vmem>>, vector<8x512xf32>,
      %29 = vector.extract_strided_slice %12 {offsets = [0, 483], sizes = [8, 512], strides = [1, 1]} : vector<8x1536xf32> to vector<8x512xf32>
      %c64 = arith.constant 64 : index
      %c0_15 = arith.constant 0 : index
      %30 = vector.load %arg8[%c64, %c0_15] : memref<256x512xf32, #tpu.memory_space<vmem>>, vector<8x512xf32>
      tpu.vector_store %arg8[%c64, %c0_15], %29 {strides = array<i32>} : memref<256x512xf32, #tpu.memory_space<vmem>>, vector<8x512xf32>,
      %31 = vector.extract_strided_slice %12 {offsets = [0, 505], sizes = [8, 512], strides = [1, 1]} : vector<8x1536xf32> to vector<8x512xf32>
      %c72 = arith.constant 72 : index
      %c0_16 = arith.constant 0 : index
      %32 = vector.load %arg8[%c72, %c0_16] : memref<256x512xf32, #tpu.memory_space<vmem>>, vector<8x512xf32>
      tpu.vector_store %arg8[%c72, %c0_16], %31 {strides = array<i32>} : memref<256x512xf32, #tpu.memory_space<vmem>>, vector<8x512xf32>,
      %33 = vector.extract_strided_slice %12 {offsets = [0, 506], sizes = [8, 512], strides = [1, 1]} : vector<8x1536xf32> to vector<8x512xf32>
      %c80 = arith.constant 80 : index
      %c0_17 = arith.constant 0 : index
      %34 = vector.load %arg8[%c80, %c0_17] : memref<256x512xf32, #tpu.memory_space<vmem>>, vector<8x512xf32>
      tpu.vector_store %arg8[%c80, %c0_17], %33 {strides = array<i32>} : memref<256x512xf32, #tpu.memory_space<vmem>>, vector<8x512xf32>,
      %35 = vector.extract_strided_slice %12 {offsets = [0, 507], sizes = [8, 512], strides = [1, 1]} : vector<8x1536xf32> to vector<8x512xf32>
      %c88 = arith.constant 88 : index
      %c0_18 = arith.constant 0 : index
      %36 = vector.load %arg8[%c88, %c0_18] : memref<256x512xf32, #tpu.memory_space<vmem>>, vector<8x512xf32>
      tpu.vector_store %arg8[%c88, %c0_18], %35 {strides = array<i32>} : memref<256x512xf32, #tpu.memory_space<vmem>>, vector<8x512xf32>,
      %37 = vector.extract_strided_slice %12 {offsets = [0, 511], sizes = [8, 512], strides = [1, 1]} : vector<8x1536xf32> to vector<8x512xf32>
      %c96 = arith.constant 96 : index
      %c0_19 = arith.constant 0 : index
      %38 = vector.load %arg8[%c96, %c0_19] : memref<256x512xf32, #tpu.memory_space<vmem>>, vector<8x512xf32>
      tpu.vector_store %arg8[%c96, %c0_19], %37 {strides = array<i32>} : memref<256x512xf32, #tpu.memory_space<vmem>>, vector<8x512xf32>,
      %39 = vector.extract_strided_slice %12 {offsets = [0, 512], sizes = [8, 512], strides = [1, 1]} : vector<8x1536xf32> to vector<8x512xf32>
      %c104 = arith.constant 104 : index
      %c0_20 = arith.constant 0 : index
      %40 = vector.load %arg8[%c104, %c0_20] : memref<256x512xf32, #tpu.memory_space<vmem>>, vector<8x512xf32>
      tpu.vector_store %arg8[%c104, %c0_20], %39 {strides = array<i32>} : memref<256x512xf32, #tpu.memory_space<vmem>>, vector<8x512xf32>,
      %41 = vector.extract_strided_slice %12 {offsets = [0, 513], sizes = [8, 512], strides = [1, 1]} : vector<8x1536xf32> to vector<8x512xf32>
      %c112 = arith.constant 112 : index
      %c0_21 = arith.constant 0 : index
      %42 = vector.load %arg8[%c112, %c0_21] : memref<256x512xf32, #tpu.memory_space<vmem>>, vector<8x512xf32>
      tpu.vector_store %arg8[%c112, %c0_21], %41 {strides = array<i32>} : memref<256x512xf32, #tpu.memory_space<vmem>>, vector<8x512xf32>,
      %43 = vector.extract_strided_slice %12 {offsets = [0, 517], sizes = [8, 512], strides = [1, 1]} : vector<8x1536xf32> to vector<8x512xf32>
      %c120 = arith.constant 120 : index
      %c0_22 = arith.constant 0 : index
      %44 = vector.load %arg8[%c120, %c0_22] : memref<256x512xf32, #tpu.memory_space<vmem>>, vector<8x512xf32>
      tpu.vector_store %arg8[%c120, %c0_22], %43 {strides = array<i32>} : memref<256x512xf32, #tpu.memory_space<vmem>>, vector<8x512xf32>,
      %45 = vector.extract_strided_slice %12 {offsets = [0, 518], sizes = [8, 512], strides = [1, 1]} : vector<8x1536xf32> to vector<8x512xf32>
      %c128 = arith.constant 128 : index
      %c0_23 = arith.constant 0 : index
      %46 = vector.load %arg8[%c128, %c0_23] : memref<256x512xf32, #tpu.memory_space<vmem>>, vector<8x512xf32>
      tpu.vector_store %arg8[%c128, %c0_23], %45 {strides = array<i32>} : memref<256x512xf32, #tpu.memory_space<vmem>>, vector<8x512xf32>,
      %47 = vector.extract_strided_slice %12 {offsets = [0, 519], sizes = [8, 512], strides = [1, 1]} : vector<8x1536xf32> to vector<8x512xf32>
      %c136 = arith.constant 136 : index
      %c0_24 = arith.constant 0 : index
      %48 = vector.load %arg8[%c136, %c0_24] : memref<256x512xf32, #tpu.memory_space<vmem>>, vector<8x512xf32>
      tpu.vector_store %arg8[%c136, %c0_24], %47 {strides = array<i32>} : memref<256x512xf32, #tpu.memory_space<vmem>>, vector<8x512xf32>,
      %49 = vector.extract_strided_slice %12 {offsets = [0, 541], sizes = [8, 512], strides = [1, 1]} : vector<8x1536xf32> to vector<8x512xf32>
      %c144 = arith.constant 144 : index
      %c0_25 = arith.constant 0 : index
      %50 = vector.load %arg8[%c144, %c0_25] : memref<256x512xf32, #tpu.memory_space<vmem>>, vector<8x512xf32>
      tpu.vector_store %arg8[%c144, %c0_25], %49 {strides = array<i32>} : memref<256x512xf32, #tpu.memory_space<vmem>>, vector<8x512xf32>,
      %51 = vector.extract_strided_slice %12 {offsets = [0, 542], sizes = [8, 512], strides = [1, 1]} : vector<8x1536xf32> to vector<8x512xf32>
      %c152 = arith.constant 152 : index
      %c0_26 = arith.constant 0 : index
      %52 = vector.load %arg8[%c152, %c0_26] : memref<256x512xf32, #tpu.memory_space<vmem>>, vector<8x512xf32>
      tpu.vector_store %arg8[%c152, %c0_26], %51 {strides = array<i32>} : memref<256x512xf32, #tpu.memory_space<vmem>>, vector<8x512xf32>,
      %53 = vector.extract_strided_slice %12 {offsets = [0, 543], sizes = [8, 512], strides = [1, 1]} : vector<8x1536xf32> to vector<8x512xf32>
      %c160 = arith.constant 160 : index
      %c0_27 = arith.constant 0 : index
      %54 = vector.load %arg8[%c160, %c0_27] : memref<256x512xf32, #tpu.memory_space<vmem>>, vector<8x512xf32>
      tpu.vector_store %arg8[%c160, %c0_27], %53 {strides = array<i32>} : memref<256x512xf32, #tpu.memory_space<vmem>>, vector<8x512xf32>,
      %55 = vector.extract_strided_slice %12 {offsets = [0, 547], sizes = [8, 512], strides = [1, 1]} : vector<8x1536xf32> to vector<8x512xf32>
      %c168 = arith.constant 168 : index
      %c0_28 = arith.constant 0 : index
      %56 = vector.load %arg8[%c168, %c0_28] : memref<256x512xf32, #tpu.memory_space<vmem>>, vector<8x512xf32>
      tpu.vector_store %arg8[%c168, %c0_28], %55 {strides = array<i32>} : memref<256x512xf32, #tpu.memory_space<vmem>>, vector<8x512xf32>,
      %57 = vector.extract_strided_slice %12 {offsets = [0, 548], sizes = [8, 512], strides = [1, 1]} : vector<8x1536xf32> to vector<8x512xf32>
      %c176 = arith.constant 176 : index
      %c0_29 = arith.constant 0 : index
      %58 = vector.load %arg8[%c176, %c0_29] : memref<256x512xf32, #tpu.memory_space<vmem>>, vector<8x512xf32>
      tpu.vector_store %arg8[%c176, %c0_29], %57 {strides = array<i32>} : memref<256x512xf32, #tpu.memory_space<vmem>>, vector<8x512xf32>,
      %59 = vector.extract_strided_slice %12 {offsets = [0, 549], sizes = [8, 512], strides = [1, 1]} : vector<8x1536xf32> to vector<8x512xf32>
      %c184 = arith.constant 184 : index
      %c0_30 = arith.constant 0 : index
      %60 = vector.load %arg8[%c184, %c0_30] : memref<256x512xf32, #tpu.memory_space<vmem>>, vector<8x512xf32>
      tpu.vector_store %arg8[%c184, %c0_30], %59 {strides = array<i32>} : memref<256x512xf32, #tpu.memory_space<vmem>>, vector<8x512xf32>,
      %61 = vector.extract_strided_slice %12 {offsets = [0, 553], sizes = [8, 512], strides = [1, 1]} : vector<8x1536xf32> to vector<8x512xf32>
      %c192 = arith.constant 192 : index
      %c0_31 = arith.constant 0 : index
      %62 = vector.load %arg8[%c192, %c0_31] : memref<256x512xf32, #tpu.memory_space<vmem>>, vector<8x512xf32>
      tpu.vector_store %arg8[%c192, %c0_31], %61 {strides = array<i32>} : memref<256x512xf32, #tpu.memory_space<vmem>>, vector<8x512xf32>,
      %63 = vector.extract_strided_slice %12 {offsets = [0, 554], sizes = [8, 512], strides = [1, 1]} : vector<8x1536xf32> to vector<8x512xf32>
      %c200 = arith.constant 200 : index
      %c0_32 = arith.constant 0 : index
      %64 = vector.load %arg8[%c200, %c0_32] : memref<256x512xf32, #tpu.memory_space<vmem>>, vector<8x512xf32>
      tpu.vector_store %arg8[%c200, %c0_32], %63 {strides = array<i32>} : memref<256x512xf32, #tpu.memory_space<vmem>>, vector<8x512xf32>,
      %65 = vector.extract_strided_slice %12 {offsets = [0, 555], sizes = [8, 512], strides = [1, 1]} : vector<8x1536xf32> to vector<8x512xf32>
      %c208 = arith.constant 208 : index
      %c0_33 = arith.constant 0 : index
      %66 = vector.load %arg8[%c208, %c0_33] : memref<256x512xf32, #tpu.memory_space<vmem>>, vector<8x512xf32>
      tpu.vector_store %arg8[%c208, %c0_33], %65 {strides = array<i32>} : memref<256x512xf32, #tpu.memory_space<vmem>>, vector<8x512xf32>,
      %cst = arith.constant 0.000000e+00 : f32
      %67 = vector.broadcast %cst : f32 to vector<40x512xf32>
      %c216 = arith.constant 216 : index
      %c0_34 = arith.constant 0 : index
      %68 = vector.load %arg8[%c216, %c0_34] : memref<256x512xf32, #tpu.memory_space<vmem>>, vector<40x512xf32>
      tpu.vector_store %arg8[%c216, %c0_34], %67 {strides = array<i32>} : memref<256x512xf32, #tpu.memory_space<vmem>>, vector<40x512xf32>,
      %c0_35 = arith.constant 0 : index
      %c0_36 = arith.constant 0 : index
      %69 = vector.load %arg8[%c0_35, %c0_36] : memref<256x512xf32, #tpu.memory_space<vmem>>, vector<256x512xf32>
      %70 = arith.truncf %69 : vector<256x512xf32> to vector<256x512xbf16>
      %c0_37 = arith.constant 0 : index
      %c0_38 = arith.constant 0 : index
      %71 = vector.load %arg4[%c0_37, %c0_38] : memref<8x256xbf16, #tpu.memory_space<vmem>>, vector<8x256xbf16>
      %cst_39 = arith.constant dense<0.000000e+00> : vector<8x512xf32>
      %72 = tpu.matmul %71, %70, %cst_39 {dimension_numbers = #tpu.dot_dimension_numbers<[1], [0], [0], [1], [0, 0, 1, 1], [], []>} : vector<8x256xbf16>, vector<256x512xbf16>, vector<8x512xf32> -> vector<8x512xf32>
      %c0_40 = arith.constant 0 : index
      %c0_41 = arith.constant 0 : index
      %73 = vector.load %arg5[%c0_40, %c0_41] : memref<8x1xf32, #tpu.memory_space<vmem>>, vector<8x1xf32>
      %74 = vector.broadcast %73 : vector<8x1xf32> to vector<8x512xf32>
      %75 = arith.addf %72, %74 : vector<8x512xf32>
      %cst_42 = arith.constant 0.000000e+00 : f32
      %76 = vector.broadcast %cst_42 : f32 to vector<8x512xf32>
      %77 = arith.cmpf ogt, %75, %76 : vector<8x512xf32>
      %78 = math.exp %75 : vector<8x512xf32>
      %cst_43 = arith.constant 1.000000e+00 : f32
      %79 = vector.broadcast %cst_43 : f32 to vector<8x512xf32>
      %80 = arith.subf %78, %79 : vector<8x512xf32>
      %81 = arith.select %77, %75, %80 : vector<8x512xi1>, vector<8x512xf32>
      %c0_44 = arith.constant 0 : index
      %c0_45 = arith.constant 0 : index
      %82 = vector.load %arg6[%c0_44, %c0_45] : memref<1x512xf32, #tpu.memory_space<vmem>>, vector<1x512xf32>
      %83 = vector.broadcast %82 : vector<1x512xf32> to vector<8x512xf32>
      %84 = arith.mulf %81, %83 : vector<8x512xf32>
      %85 = arith.truncf %84 : vector<8x512xf32> to vector<8x512xbf16>
      %c0_46 = arith.constant 0 : index
      %c0_47 = arith.constant 0 : index
      %86 = vector.load %arg7[%c0_46, %c0_47] : memref<8x512xbf16, #tpu.memory_space<vmem>>, vector<8x512xbf16>
      tpu.vector_store %arg7[%c0_46, %c0_47], %85 {strides = array<i32>} : memref<8x512xbf16, #tpu.memory_space<vmem>>, vector<8x512xbf16>,
    } else {
    }
    return
  }
  func.func @transform_0(%arg0: i32) -> (i32, i32) {
    %c1_i32 = arith.constant 1 : i32
    %0 = arith.subi %arg0, %c1_i32 : i32
    %c0_i32 = arith.constant 0 : i32
    %1 = arith.maxsi %0, %c0_i32 : i32
    %c0_i32_0 = arith.constant 0 : i32
    %c0_i32_1 = arith.constant 0 : i32
    return %c0_i32_0, %1 : i32, i32
  }
  func.func @transform_1(%arg0: i32) -> (i32, i32) {
    %c0_i32 = arith.constant 0 : i32
    %c0_i32_0 = arith.constant 0 : i32
    return %c0_i32, %arg0 : i32, i32
  }
  func.func @transform_2(%arg0: i32) -> (i32, i32) {
    %c1_i32 = arith.constant 1 : i32
    %0 = arith.addi %arg0, %c1_i32 : i32
    %c2_i32 = arith.constant 2 : i32
    %1 = arith.minsi %0, %c2_i32 : i32
    %c0_i32 = arith.constant 0 : i32
    %c0_i32_0 = arith.constant 0 : i32
    return %c0_i32, %1 : i32, i32
  }
  func.func @transform_3(%arg0: i32) -> (i32, i32) {
    %c0_i32 = arith.constant 0 : i32
    %c0_i32_0 = arith.constant 0 : i32
    %c0_i32_1 = arith.constant 0 : i32
    return %c0_i32, %c0_i32_0 : i32, i32
  }
  func.func @transform_4(%arg0: i32) -> (i32, i32) {
    %c0_i32 = arith.constant 0 : i32
    %c0_i32_0 = arith.constant 0 : i32
    %c0_i32_1 = arith.constant 0 : i32
    return %c0_i32, %c0_i32_0 : i32, i32
  }
  func.func @transform_5(%arg0: i32) -> (i32, i32) {
    %c0_i32 = arith.constant 0 : i32
    %c0_i32_0 = arith.constant 0 : i32
    return %c0_i32, %arg0 : i32, i32
  }
  func.func @transform_6(%arg0: i32) -> (i32, i32) {
    %c0_i32 = arith.constant 0 : i32
    %c0_i32_0 = arith.constant 0 : i32
    return %c0_i32, %arg0 : i32, i32
  }
}

</mosaic_0001>

<bundles_post_ra>
// kernel: down_transition_forward.3
= control target key start
LH: loop header
LB: loop body
LE: loop exit
PB: predicated region body
PF: predicated region fallthrough
CT: control target
= control target key end

     0   :  { %v116_v0 = vmov 0.0   ;;  %vm117_vm0 = vmmov 0   ;;  %v118_v2 = vmov 0   ;;  %vm38_vm1 = vcmask 261120   ;;  %s154_s1 = inlined_call_operand.vmem [shape: bf16[32,128], index: 1, kind: input, shape index: {}]   ;;  %s155_s2 = inlined_call_operand.vmem [shape: f32[8,1], index: 2, kind: input, shape index: {}]   ;;  %s156_s0 = inlined_call_operand.vmem [shape: bf16[8,32], index: 0, kind: input, shape index: {}]   ;;  %s157_s3 = inlined_call_operand.vmem [shape: bf16[8,128], index: 3, kind: output, shape index: {}]  }
   0x1   :  { %100 = vmatprep.subr.bf16.mxu0 %v116_v0  ;;  %v112_v1 = vld [vmem:[%s154_s1] sm:$0xff]   ;;  %104 = vmatprep.mubr.msk.bf16.mxu0 %vm117_vm0, %v116_v0  ;;  %v113_v3 = vld [vmem:[%s154_s1 + $0x8] sm:$0xff]  }
   0x2   :  { %111 = vset.pattern.permute.xlu0 %v118_v2  ;;  %101 = vmatpush3.bf16.msra.mxu0 %v112_v1  ;;  %v20_v4 = vld [vmem:[%s155_s2] sm:$0xff] }
   0x3   :  { %102 = vmatprep.subr.bf16.mxu0 %v116_v0  ;;  %23 = vperm.xlu0 %111, %v20_v4   ;;  %v15_v5 = vld [vmem:[%s156_s0] sm:$0xf] }
   0x6   :  { %103 = vmatpush3.bf16.msra.mxu0 %v113_v3 }
   0x9   :  { %105 = vmatmul.mubr.msk.bf16.vlgmr.msra.gmra.mrb[0].mxu0 %vm38_vm1, %v15_v5 }
  0x82   :  { %v24_v6 = vpop.permute.xlu0 %23 }
  0xdc   :  { %v76_v7 = vpop.f32.mrb[0].mxu0 }
  0xdd   :  { %v77_v8 = vadd.f32 %v76_v7, %v24_v6  ;;  %v106_v9 = vpop.f32.mrb[1].mxu0 }
  0xde   :  { %v79_v10 = vpop.f32.mrb[2].mxu0 }
  0xdf   :  { %v83_v11 = vmul.f32 1.442695, %v77_v8  ;;  %v107_v12 = vpop.f32.mrb[3].mxu0  ;;  %vm82_vm2 = vcmp.gt.f32.partialorder %v77_v8, 0.0 }
  0xe1   :  { %114 = vpow2.f32 %v83_v11 }
  0xeb   :  { %v115_v13 = vpop.eup %114 }
  0xec   :  { %v96_v14 = vadd.f32 -1.0, %v115_v13 }
  0xee   :  { %v86_v15 = vsel %vm82_vm2, %v77_v8, %v96_v14 }
  0xef   :  { %v87_v16 = vpack.c.bf16 %v86_v15, %v86_v15 }
  0xf1   :  { %88 = vst [vmem:[%s157_s3] sm:$0xf] %v87_v16 }

// kernel: down_transition_forward.5
= control target key start
LH: loop header
LB: loop body
LE: loop exit
PB: predicated region body
PF: predicated region fallthrough
CT: control target
= control target key end

     0   :  { %s1987_s24 = smov 0   ;;  %s2237_s0 = inlined_call_operand.vmem [shape: bf16[8,1536], index: 0, kind: input, shape index: {}, may-alias: {0,1,2}]   ;;  %s2238_s1 = inlined_call_operand.vmem [shape: bf16[8,1536], index: 1, kind: input, shape index: {}, may-alias: {0,1,2}]   ;;  %s2239_s2 = inlined_call_operand.vmem [shape: bf16[8,1536], index: 2, kind: input, shape index: {}, may-alias: {0,1,2}]   ;;  %s2240_s3 = inlined_call_operand.vmem [shape: bf16[8,256], index: 3, kind: input, shape index: {}]   ;;  %s2241_s4 = inlined_call_operand.vmem [shape: f32[8,1], index: 4, kind: input, shape index: {}]   ;;  %s2242_s5 = inlined_call_operand.vmem [shape: f32[1,1536], index: 5, kind: input, shape index: {}]   ;;  %s2243_s6 = inlined_call_operand.vmem [shape: bf16[8,1536], index: 6, kind: input, shape index: {}]   ;;  %s2244_s7 = inlined_call_operand.vmem [shape: f32[8,1536], index: 7, kind: output, shape index: {}]  }
   0x1 LB: > { %s1993_s25 = sadd.s32 4294967295, %s1916_s24   ;;  %p1557_p0 = scmp.ge.s32.totalorder %s1916_s24, 1  ;;  %s1916_s24 = sphi %s1987_s24, %s17_s24  }
   0x2   : > { %p305_p1 = scmp.lt.s32.totalorder %s1916_s24, 4 }
   0x4   : > { %p306_p2 = pnand %p1557_p0, %p305_p1 }
   0x5   : > { %s1558_s26 = sadd.s32 (!%p306_p2), 4294967295, %s1993_s25  ;;  %s1561_s27 = sshll.u32 (!%p306_p2), %s1993_s25, 2 }
   0x6   : > { %309 = sbr.rel (%p306_p2) target bundleno = 559 (0x22f), region = 48  ;;  %p363_p3 = scmp.gt.s32.totalorder (!%p306_p2), %s1558_s26, 0 }
   0x7   : > { %p375_p4 = scmp.lt.s32.totalorder (!%p306_p2), %s1561_s27, 11  ;;  %s380_s28 = sadd.s32 (!%p306_p2), 1, %s1993_s25 }
   0x8   : > { %p409_p5 = scmp.ge.s32.totalorder (!%p306_p2), %s1993_s25, 1  ;;  %p381_p6 = scmp.lt.s32.totalorder (!%p306_p2), %s380_s28, 2 }
   0x9   : > { %p410_p9 = scmp.lt.s32.totalorder (!%p306_p2), %s1993_s25, 2 }
   0xb   : > { %p2028_p10 = pnand (!%p306_p2), %p410_p9, %p409_p5 }
   0xd   : > { %s2247_s26 = smov (!%p363_p3, %s1558_s26), 0  ;;  %s2249_s27 = smov (!%p375_p4, %s1561_s27), 11 }
   0xe   : > { %s1559_s29 = sshll.u32 %s2247_s26, 2  ;;  %s1562_s30 = sshll.u32 %s2249_s27, 2  ;;  %vm462_vm0 = vcmask (!%p2028_p10), 351232   ;;  %vm485_vm1 = vcmask (!%p2028_p10), 343040   ;;  %vm508_vm2 = vcmask (!%p2028_p10), 334848   ;;  %vm531_vm3 = vcmask (!%p2028_p10), 302080  }
   0xf   : > { %p366_p7 = scmp.lt.s32.totalorder %s1559_s29, 11  ;;  %s378_s10 = scalar_lea.vmem %s2238_s1, %s1562_s30  ;;  %vm554_vm4 = vcmask (!%p2028_p10), 293888   ;;  %vm577_vm5 = vcmask (!%p2028_p10), 285696   ;;  %vm600_vm6 = vcmask (!%p2028_p10), 252928   ;;  %vm623_vm7 = vcmask (!%p2028_p10), 244736  }
  0x10   : > { %s395_s13 = scalar_lea.vmem %s2242_s5, %s2249_s27  ;;  %s2253_s28 = smov (!%p381_p6, %s380_s28), 2  ;;  %v416_v0 = vld [vmem:[%s378_s10] sm:$0xff] (!%p2028_p10)  ;;  %v417_v1 = vld [vmem:[%s378_s10 + $0x8] sm:$0xff] (!%p2028_p10)  ;;  %vm646_vm8 = vcmask (!%p2028_p10), 236544   ;;  %vm669_vm9 = vcmask (!%p2028_p10), 56320   ;;  %vm692_vm10 = vcmask (!%p2028_p10), 48128  }
  0x11   : > { %s2251_s29 = smov (!%p366_p7, %s1559_s29), 11  ;;  %s2014_s17 = scalar_lea.vmem %s2243_s6, %s1562_s30  ;;  %v1571_v2 = vcombine.low (!%p2028_p10), %v416_v0, %v416_v0  ;;  %v1572_v3 = vcombine.high (!%p2028_p10), %v416_v0, %v416_v0  ;;  %v1573_v4 = vcombine.low (!%p2028_p10), %v417_v1, %v417_v1  ;;  %v1574_v5 = vcombine.high (!%p2028_p10), %v417_v1, %v417_v1 }
  0x12   : > { %s1560_s14 = sshll.u32 %s2251_s29, 2  ;;  %s1563_s21 = sshll.u32 %s2253_s28, 2  ;;  %vm715_vm11 = vcmask (!%p2028_p10), 39936   ;;  %vm738_vm12 = vcmask (!%p2028_p10), 7168   ;;  %vm766_vm13 = vcmask (!%p2028_p10), 1039360   ;;  %vm789_vm14 = vcmask (!%p2028_p10), 1006592  }
  0x13   : > { %s369_s20 = scalar_lea.vmem %s2237_s0, %s1560_s14  ;;  %p384_p8 = scmp.lt.s32.totalorder %s1563_s21, 11  ;;  %v2039_v6 = vunpack.c.l.bf16 (!%p2028_p10), %v1571_v2  ;;  %v2041_v7 = vunpack.c.l.bf16 (!%p2028_p10), %v1572_v3  ;;  %v2043_v8 = vunpack.c.l.bf16 (!%p2028_p10), %v1573_v4  ;;  %v2045_v9 = vunpack.c.l.bf16 (!%p2028_p10), %v1574_v5 }
  0x14   : > { %s1569_s22 = sshll.u32 %s2249_s27, 3  ;;  %414 = sbr.rel (%p2028_p10) target bundleno = 552 (0x228), region = 52  ;;  %v1890_v12 = vld [vmem:[%s369_s20 + $0xc] ss:$0 sps:$4 sm:$0xff] (!%p2028_p10)   ;;  %vm812_vm15 = vcmask (!%p2028_p10), 998400  }
  0x15   : > { %s2023_s8 = scalar_lea.vmem %s2244_s7, %s1569_s22  ;;  %s2255_s21 = smov (!%p384_p8, %s1563_s21), 11  ;;  %v1635_v10 = vpack.i.bf16 (!%p2028_p10), %v2041_v7, %v2039_v6  ;;  %v1640_v11 = vpack.i.bf16 (!%p2028_p10), %v2045_v9, %v2043_v8  ;;  %v441_v13 = vunpack.c.l.bf16 (!%p2028_p10), %v1890_v12  ;;  %v2054_v15 = vpack.i.bf16 (!%p2028_p10), %v2043_v8, %v2041_v7 }
  0x16   : > { %s1564_s30 = sshll.u32 %s2255_s21, 2  ;;  %s1918_s25 = smov (!%p2028_p10), 42  }
  0x17   : > { %s2035_s12 = scalar_lea.vmem %s2239_s2, %s1564_s30  ;;  %1636 = vrot.lane.b32.xlu1 (!%p2028_p10), %v1635_v10, %s1918_s25  ;;  %s1919_s28 = smov (!%p2028_p10), 43  }
  0x18   : > { %1626 = vrot.lane.b32.xlu0 (!%p2028_p10), %v1635_v10, %s1919_s28  ;;  %s1920_s10 = smov (!%p2028_p10), 41   ;;  %s1921_s14 = smov (!%p2028_p10), 37   ;;  %v1891_v14 = vld [vmem:[%s2035_s12] ss:$0 sps:$4 sm:$0xff] (!%p2028_p10)  }
  0x19   : > { %s1922_s15 = smov (!%p2028_p10), 36   ;;  %s1923_s16 = smov (!%p2028_p10), 35   ;;  %v446_v16 = vunpack.c.l.bf16 (!%p2028_p10), %v1891_v14 }
  0x1a   : > { %s1924_s18 = smov (!%p2028_p10), 31   ;;  %s1925_s19 = smov (!%p2028_p10), 30  }
  0x1b   : > { %1641 = vrot.lane.b32.xlu1 %v1640_v11, %s1918_s25  ;;  %s1926_s20 = smov 29   ;;  %s1927_s21 = smov 7   ;;  %v2058_v17 = vpack.i.bf16 %v446_v16, %v2045_v9 }
  0x1c   : > { %1631 = vrot.lane.b32.xlu0 %v1640_v11, %s1919_s28  ;;  %s1928_s22 = smov 6   ;;  %s1929_s23 = smov 5  }
  0x1d   : > { %s1930_s26 = smov 1   ;;  %s1931_s30 = smov 127  }
  0x1e   : > { %s1932_s9 = smov 123   ;;  %s1933_s11 = smov 122  }
  0x1f   : > { %475 = vrot.lane.b32.xlu1 %v441_v13, %s1918_s25  ;;  %s1934_s12 = smov 121   ;;  %s1935_s25 = smov 99  }
  0x20   : > { %452 = vrot.lane.b32.xlu0 %v441_v13, %s1919_s28  ;;  %s1936_s28 = smov 98  }
  0x23   : > { %1651 = vrot.lane.b32.xlu1 %v1640_v11, %s1920_s10 }
  0x24   : > { %1646 = vrot.lane.b32.xlu0 %v1635_v10, %s1920_s10 }
  0x27   : > { %1661 = vrot.lane.b32.xlu1 %v1640_v11, %s1921_s14 }
  0x28   : > { %1656 = vrot.lane.b32.xlu0 %v1635_v10, %s1921_s14 }
  0x2b   : > { %521 = vrot.lane.b32.xlu1 %v441_v13, %s1921_s14  ;;  %s1938_s14 = smov 93  }
  0x2c   : > { %498 = vrot.lane.b32.xlu0 %v441_v13, %s1920_s10  ;;  %s1937_s10 = smov 97  }
  0x2f   : > { %1671 = vrot.lane.b32.xlu1 %v1640_v11, %s1922_s15 }
  0x30   : > { %1666 = vrot.lane.b32.xlu0 %v1635_v10, %s1922_s15 }
  0x33   : > { %1681 = vrot.lane.b32.xlu1 %v1640_v11, %s1923_s16 }
  0x34   : > { %1676 = vrot.lane.b32.xlu0 %v1635_v10, %s1923_s16 }
  0x37   : > { %567 = vrot.lane.b32.xlu1 %v441_v13, %s1923_s16  ;;  %s1940_s16 = smov 91  }
  0x38   : > { %544 = vrot.lane.b32.xlu0 %v441_v13, %s1922_s15  ;;  %s1939_s15 = smov 92  }
  0x3b   : > { %1691 = vrot.lane.b32.xlu1 %v1640_v11, %s1924_s18 }
  0x3c   : > { %1686 = vrot.lane.b32.xlu0 %v1635_v10, %s1924_s18 }
  0x3f   : > { %1701 = vrot.lane.b32.xlu1 %v1640_v11, %s1925_s19 }
  0x40   : > { %1696 = vrot.lane.b32.xlu0 %v1635_v10, %s1925_s19 }
  0x43   : > { %613 = vrot.lane.b32.xlu1 %v441_v13, %s1925_s19  ;;  %s1942_s19 = smov 86  }
  0x44   : > { %590 = vrot.lane.b32.xlu0 %v441_v13, %s1924_s18  ;;  %s1941_s18 = smov 87  }
  0x47   : > { %1711 = vrot.lane.b32.xlu1 %v1640_v11, %s1926_s20 }
  0x48   : > { %1706 = vrot.lane.b32.xlu0 %v1635_v10, %s1926_s20 }
  0x4b   : > { %1721 = vrot.lane.b32.xlu1 %v1640_v11, %s1927_s21 }
  0x4c   : > { %1716 = vrot.lane.b32.xlu0 %v1635_v10, %s1927_s21 }
  0x4f   : > { %659 = vrot.lane.b32.xlu1 %v441_v13, %s1927_s21 }
  0x50   : > { %636 = vrot.lane.b32.xlu0 %v441_v13, %s1926_s20 }
  0x53   : > { %1731 = vrot.lane.b32.xlu1 %v1640_v11, %s1928_s22 }
  0x54   : > { %1726 = vrot.lane.b32.xlu0 %v1635_v10, %s1928_s22 }
  0x57   : > { %1741 = vrot.lane.b32.xlu1 %v1640_v11, %s1929_s23 }
  0x58   : > { %1736 = vrot.lane.b32.xlu0 %v1635_v10, %s1929_s23 }
  0x5b   : > { %705 = vrot.lane.b32.xlu1 %v441_v13, %s1929_s23 }
  0x5c   : > { %682 = vrot.lane.b32.xlu0 %v441_v13, %s1928_s22  ;;  %s1943_s22 = smov 85  }
  0x5f   : > { %1751 = vrot.lane.b32.xlu1 %v1640_v11, %s1930_s26 }
  0x60   : > { %1746 = vrot.lane.b32.xlu0 %v1635_v10, %s1930_s26 }
  0x63   : > { %1756 = vrot.lane.b32.xlu1 %v2054_v15, %s1931_s30 }
  0x64   : > { %728 = vrot.lane.b32.xlu0 %v441_v13, %s1930_s26 }
  0x67   : > { %1766 = vrot.lane.b32.xlu1 %v2054_v15, %s1932_s9 }
  0x68   : > { %1761 = vrot.lane.b32.xlu0 %v2058_v17, %s1931_s30 }
  0x6b   : > { %756 = vrot.lane.b32.xlu1 %v2039_v6, %s1931_s30 }
  0x6c   : > { %1771 = vrot.lane.b32.xlu0 %v2058_v17, %s1932_s9 }
  0x6f   : > { %1776 = vrot.lane.b32.xlu1 %v2054_v15, %s1933_s11 }
  0x70   : > { %779 = vrot.lane.b32.xlu0 %v2039_v6, %s1932_s9 }
  0x73   : > { %1786 = vrot.lane.b32.xlu1 %v2054_v15, %s1934_s12 }
  0x74   : > { %1781 = vrot.lane.b32.xlu0 %v2058_v17, %s1933_s11 }
  0x77   : > { %802 = vrot.lane.b32.xlu1 %v2039_v6, %s1933_s11 }
  0x78   : > { %1791 = vrot.lane.b32.xlu0 %v2058_v17, %s1934_s12 }
  0x7b   : > { %1796 = vrot.lane.b32.xlu1 %v2054_v15, %s1935_s25 }
  0x7c   : > { %825 = vrot.lane.b32.xlu0 %v2039_v6, %s1934_s12 }
  0x7f   : > { %1806 = vrot.lane.b32.xlu1 %v2054_v15, %s1936_s28 }
  0x80   : > { %1801 = vrot.lane.b32.xlu0 %v2058_v17, %s1935_s25 }
  0x83   : > { %848 = vrot.lane.b32.xlu1 %v2039_v6, %s1935_s25 }
  0x84   : > { %1811 = vrot.lane.b32.xlu0 %v2058_v17, %s1936_s28 }
  0x87   : > { %1816 = vrot.lane.b32.xlu1 %v2054_v15, %s1937_s10 }
  0x88   : > { %871 = vrot.lane.b32.xlu0 %v2039_v6, %s1936_s28 }
  0x89   : > { %v1637_v18 = vpop.permute.xlu1 %1636 }
  0x8a   : > { %v1627_v19 = vpop.permute.xlu0 %1626  ;;  %v1639_v20 = vunpack.i.h.bf16 %v1637_v18  ;;  %v1638_v21 = vunpack.i.l.bf16 %v1637_v18 }
  0x8b   : > { %v1629_v22 = vunpack.i.h.bf16 %v1627_v19  ;;  %v1628_v23 = vunpack.i.l.bf16 %v1627_v19  ;;  %1826 = vrot.lane.b32.xlu1 %v2054_v15, %s1938_s14 }
  0x8c   : > { %1821 = vrot.lane.b32.xlu0 %v2058_v17, %s1937_s10  ;;  %v487_v25 = vsel %vm485_vm1, %v1638_v21, %v1639_v20 }
  0x8d   : > { %v464_v24 = vsel %vm462_vm0, %v1628_v23, %v1629_v22  ;;  %v1642_v26 = vpop.permute.xlu1 %1641 }
  0x8e   : > { %v1632_v27 = vpop.permute.xlu0 %1631  ;;  %v1204_v28 = vpack.c.bf16 %v487_v25, %v464_v24  ;;  %v1644_v29 = vunpack.i.h.bf16 %v1642_v26  ;;  %v1643_v30 = vunpack.i.l.bf16 %v1642_v26 }
  0x8f   : > { %v1634_v31 = vunpack.i.h.bf16 %v1632_v27  ;;  %v1633_v32 = vunpack.i.l.bf16 %v1632_v27  ;;  %894 = vrot.lane.b32.xlu1 %v2039_v6, %s1937_s10 }
  0x90   : > { %1281 = vmatprep.subr.bf16.mxu0 %v1204_v28  ;;  %1831 = vrot.lane.b32.xlu0 %v2058_v17, %s1938_s14  ;;  %v489_v34 = vsel %vm485_vm1, %v1643_v30, %v1644_v29  ;;  %v488_v36 = vsel %vm485_vm1, %v1639_v20, %v1643_v30 }
  0x91   : > { %v466_v33 = vsel %vm462_vm0, %v1633_v32, %v1634_v31  ;;  %v465_v35 = vsel %vm462_vm0, %v1629_v22, %v1633_v32  ;;  %v476_v37 = vpop.permute.xlu1 %475 }
  0x92   : > { %v453_v38 = vpop.permute.xlu0 %452  ;;  %v1206_v39 = vpack.c.bf16 %v489_v34, %v466_v33  ;;  %v1205_v40 = vpack.c.bf16 %v488_v36, %v465_v35  ;;  %v486_v41 = vsel %vm485_vm1, %v476_v37, %v1638_v21  ;;  %v2113_v21 = vld [vmem:[%s2240_s3] sm:$0xff]  ;;  %vm858_vm1 = vcmask 809984  }
  0x93   : > { %v463_v42 = vsel %vm462_vm0, %v453_v38, %v1628_v23  ;;  %1836 = vrot.lane.b32.xlu1 %v2054_v15, %s1939_s15  ;;  %v1577_v27 = vcombine.high %v2113_v21, %v2113_v21  ;;  %vm835_vm0 = vcmask 990208  }
  0x94   : > { %1322 = vmatprep.subr.bf16.mxu1 %v1206_v39  ;;  %v1203_v43 = vpack.c.bf16 %v486_v41, %v463_v42  ;;  %917 = vrot.lane.b32.xlu0 %v2039_v6, %s1938_s14 }
  0x95   : > { %1323 = vmatpush1.bf16.msra.mxu1 %v1205_v40  ;;  %v1652_v44 = vpop.permute.xlu1 %1651  ;;  %1313 = vmatprep.mubr.bf16.mxu0 %v1577_v27 }
  0x96   : > { %1282 = vmatpush1.bf16.msra.mxu0 %v1203_v43  ;;  %v1647_v45 = vpop.permute.xlu0 %1646  ;;  %v1654_v46 = vunpack.i.h.bf16 %v1652_v44  ;;  %v1653_v47 = vunpack.i.l.bf16 %v1652_v44  ;;  %1354 = vmatprep.mubr.bf16.mxu1 %v1577_v27  ;;  %v1944_v43 = vmov 0  }
  0x97   : > { %v1649_v48 = vunpack.i.h.bf16 %v1647_v45  ;;  %v1648_v49 = vunpack.i.l.bf16 %v1647_v45  ;;  %1846 = vrot.lane.b32.xlu1 %v2054_v15, %s1940_s16  ;;  %1885 = vset.pattern.permute.xlu0 %v1944_v43 }
  0x98   : > { %1841 = vrot.lane.b32.xlu0 %v2058_v17, %s1939_s15  ;;  %v512_v52 = vsel %vm508_vm2, %v1653_v47, %v1654_v46 }
  0x99   : > { %v1662_v50 = vpop.permute.xlu1 %1661  ;;  %v510_v57 = vsel %vm508_vm2, %v1648_v49, %v1649_v48  ;;  %v511_v60 = vsel %vm508_vm2, %v1649_v48, %v1653_v47 }
  0x9a   : > { %v1657_v51 = vpop.permute.xlu0 %1656  ;;  %v1664_v53 = vunpack.i.h.bf16 %v1662_v50  ;;  %v1663_v54 = vunpack.i.l.bf16 %v1662_v50 }
  0x9b   : > { %v1659_v55 = vunpack.i.h.bf16 %v1657_v51  ;;  %v1658_v56 = vunpack.i.l.bf16 %v1657_v51  ;;  %940 = vrot.lane.b32.xlu1 %v2039_v6, %s1939_s15 }
  0x9c   : > { %1851 = vrot.lane.b32.xlu0 %v2058_v17, %s1940_s16  ;;  %v535_v58 = vsel %vm531_vm3, %v1663_v54, %v1664_v53 }
  0x9d   : > { %v533_v59 = vsel %vm531_vm3, %v1658_v56, %v1659_v55  ;;  %v534_v61 = vsel %vm531_vm3, %v1659_v55, %v1663_v54  ;;  %v522_v62 = vpop.permute.xlu1 %521  ;;  %v1210_v0 = vpack.c.bf16 %v535_v58, %v512_v52 }
  0x9e   : > { %v499_v63 = vpop.permute.xlu0 %498  ;;  %v1208_v1 = vpack.c.bf16 %v533_v59, %v510_v57  ;;  %v1209_v2 = vpack.c.bf16 %v534_v61, %v511_v60  ;;  %v532_v3 = vsel %vm531_vm3, %v522_v62, %v1658_v56  ;;  %vm904_vm3 = vcmask 793600  }
  0x9f   : > { %v509_v4 = vsel %vm508_vm2, %v499_v63, %v1648_v49  ;;  %1856 = vrot.lane.b32.xlu1 %v2054_v15, %s1941_s18  ;;  %1324 = vmatprep.subr.bf16.mxu1 %v1210_v0  ;;  %v1268_v49 = vld [vmem:[%s2241_s4] sm:$0xff]  ;;  %vm881_vm2 = vcmask 801792  }
  0xa0   : > { %v1207_v5 = vpack.c.bf16 %v532_v3, %v509_v4  ;;  %963 = vrot.lane.b32.xlu0 %v2039_v6, %s1940_s16  ;;  %1283 = vmatprep.subr.bf16.mxu0 %v1208_v1 }
  0xa1   : > { %1325 = vmatpush1.bf16.msra.mxu1 %v1209_v2  ;;  %v1672_v10 = vpop.permute.xlu1 %1671 }
  0xa2   : > { %v1667_v11 = vpop.permute.xlu0 %1666  ;;  %1284 = vmatpush1.bf16.msra.mxu0 %v1207_v5  ;;  %v1674_v12 = vunpack.i.h.bf16 %v1672_v10  ;;  %v1673_v13 = vunpack.i.l.bf16 %v1672_v10 }
  0xa3   : > { %v1669_v14 = vunpack.i.h.bf16 %v1667_v11  ;;  %v1668_v16 = vunpack.i.l.bf16 %v1667_v11  ;;  %1866 = vrot.lane.b32.xlu1 %v2054_v15, %s1942_s19 }
  0xa4   : > { %1861 = vrot.lane.b32.xlu0 %v2058_v17, %s1941_s18  ;;  %v558_v20 = vsel %vm554_vm4, %v1673_v13, %v1674_v12 }
  0xa5   : > { %v1682_v18 = vpop.permute.xlu1 %1681  ;;  %v556_v26 = vsel %vm554_vm4, %v1668_v16, %v1669_v14  ;;  %v557_v30 = vsel %vm554_vm4, %v1669_v14, %v1673_v13 }
  0xa6   : > { %v1677_v19 = vpop.permute.xlu0 %1676  ;;  %v1684_v22 = vunpack.i.h.bf16 %v1682_v18  ;;  %v1683_v23 = vunpack.i.l.bf16 %v1682_v18 }
  0xa7   : > { %v1679_v24 = vunpack.i.h.bf16 %v1677_v19  ;;  %v1678_v25 = vunpack.i.l.bf16 %v1677_v19  ;;  %986 = vrot.lane.b32.xlu1 %v2039_v6, %s1941_s18 }
  0xa8   : > { %1871 = vrot.lane.b32.xlu0 %v2058_v17, %s1942_s19  ;;  %v581_v29 = vsel %vm577_vm5, %v1683_v23, %v1684_v22 }
  0xa9   : > { %v579_v28 = vsel %vm577_vm5, %v1678_v25, %v1679_v24  ;;  %v580_v31 = vsel %vm577_vm5, %v1679_v24, %v1683_v23  ;;  %v568_v32 = vpop.permute.xlu1 %567  ;;  %v1214_v35 = vpack.c.bf16 %v581_v29, %v558_v20 }
  0xaa   : > { %v545_v33 = vpop.permute.xlu0 %544  ;;  %v1212_v34 = vpack.c.bf16 %v579_v28, %v556_v26  ;;  %v1213_v36 = vpack.c.bf16 %v580_v31, %v557_v30  ;;  %v578_v37 = vsel %vm577_vm5, %v568_v32, %v1678_v25  ;;  %vm950_vm5 = vcmask 752640  }
  0xab   : > { %v555_v38 = vsel %vm554_vm4, %v545_v33, %v1668_v16  ;;  %1876 = vrot.lane.b32.xlu1 %v2054_v15, %s1943_s22  ;;  %1326 = vmatprep.subr.bf16.mxu1 %v1214_v35  ;;  %vm927_vm4 = vcmask 760832  }
  0xac   : > { %v1211_v39 = vpack.c.bf16 %v578_v37, %v555_v38  ;;  %1285 = vmatprep.subr.bf16.mxu0 %v1212_v34  ;;  %1009 = vrot.lane.b32.xlu0 %v2039_v6, %s1942_s19 }
  0xad   : > { %1327 = vmatpush1.bf16.msra.mxu1 %v1213_v36  ;;  %v1692_v40 = vpop.permute.xlu1 %1691 }
  0xae   : > { %v1687_v41 = vpop.permute.xlu0 %1686  ;;  %1286 = vmatpush1.bf16.msra.mxu0 %v1211_v39  ;;  %v1694_v42 = vunpack.i.h.bf16 %v1692_v40  ;;  %v1693_v44 = vunpack.i.l.bf16 %v1692_v40 }
  0xaf   : > { %v1689_v45 = vunpack.i.h.bf16 %v1687_v41  ;;  %v1688_v46 = vunpack.i.l.bf16 %v1687_v41  ;;  %1032 = vrot.lane.b32.xlu1 %v2039_v6, %s1943_s22 }
  0xb0   : > { %1881 = vrot.lane.b32.xlu0 %v2058_v17, %s1943_s22  ;;  %v604_v48 = vsel %vm600_vm6, %v1693_v44, %v1694_v42 }
  0xb1   : > { %v1702_v15 = vpop.permute.xlu1 %1701  ;;  %v602_v54 = vsel %vm600_vm6, %v1688_v46, %v1689_v45  ;;  %v603_v56 = vsel %vm600_vm6, %v1689_v45, %v1693_v44 }
  0xb2   : > { %v1697_v47 = vpop.permute.xlu0 %1696  ;;  %v1704_v50 = vunpack.i.h.bf16 %v1702_v15  ;;  %v1703_v51 = vunpack.i.l.bf16 %v1702_v15 }
  0xb3   : > { %v1699_v52 = vunpack.i.h.bf16 %v1697_v47  ;;  %v1698_v53 = vunpack.i.l.bf16 %v1697_v47 }
  0xb4   : > { %v627_v17 = vsel %vm623_vm7, %v1703_v51, %v1704_v50  ;;  %1271 = vperm.xlu0 %1885, %v1268_v49  }
  0xb5   : > { %v625_v55 = vsel %vm623_vm7, %v1698_v53, %v1699_v52  ;;  %v626_v57 = vsel %vm623_vm7, %v1699_v52, %v1703_v51  ;;  %v614_v58 = vpop.permute.xlu1 %613  ;;  %v1218_v61 = vpack.c.bf16 %v627_v17, %v604_v48 }
  0xb6   : > { %v591_v59 = vpop.permute.xlu0 %590  ;;  %v1216_v60 = vpack.c.bf16 %v625_v55, %v602_v54  ;;  %v1217_v62 = vpack.c.bf16 %v626_v57, %v603_v56  ;;  %v624_v63 = vsel %vm623_vm7, %v614_v58, %v1698_v53  ;;  %vm996_vm7 = vcmask 711680  }
  0xb7   : > { %v601_v0 = vsel %vm600_vm6, %v591_v59, %v1688_v46  ;;  %1328 = vmatprep.subr.bf16.mxu1 %v1218_v61  ;;  %vm973_vm6 = vcmask 744448  }
  0xb8   : > { %v1215_v1 = vpack.c.bf16 %v624_v63, %v601_v0  ;;  %1287 = vmatprep.subr.bf16.mxu0 %v1216_v60  ;;  %1329 = vmatpush1.bf16.msra.mxu1 %v1217_v62 }
  0xb9   : > { %v1712_v2 = vpop.permute.xlu1 %1711 }
  0xba   : > { %v1707_v3 = vpop.permute.xlu0 %1706  ;;  %1288 = vmatpush1.bf16.msra.mxu0 %v1215_v1  ;;  %v1714_v4 = vunpack.i.h.bf16 %v1712_v2  ;;  %v1713_v5 = vunpack.i.l.bf16 %v1712_v2 }
  0xbb   : > { %v1709_v10 = vunpack.i.h.bf16 %v1707_v3  ;;  %v1708_v11 = vunpack.i.l.bf16 %v1707_v3 }
  0xbc   : > { %v650_v14 = vsel %vm646_vm8, %v1713_v5, %v1714_v4 }
  0xbd   : > { %v1722_v12 = vpop.permute.xlu1 %1721  ;;  %v648_v22 = vsel %vm646_vm8, %v1708_v11, %v1709_v10  ;;  %v649_v25 = vsel %vm646_vm8, %v1709_v10, %v1713_v5 }
  0xbe   : > { %v1717_v13 = vpop.permute.xlu0 %1716  ;;  %v1724_v16 = vunpack.i.h.bf16 %v1722_v12  ;;  %v1723_v18 = vunpack.i.l.bf16 %v1722_v12 }
  0xbf   : > { %v1719_v19 = vunpack.i.h.bf16 %v1717_v13  ;;  %v1718_v20 = vunpack.i.l.bf16 %v1717_v13 }
  0xc0   : > { %v673_v24 = vsel %vm669_vm9, %v1723_v18, %v1724_v16 }
  0xc1   : > { %v671_v23 = vsel %vm669_vm9, %v1718_v20, %v1719_v19  ;;  %v672_v26 = vsel %vm669_vm9, %v1719_v19, %v1723_v18  ;;  %v660_v27 = vpop.permute.xlu1 %659  ;;  %v1222_v30 = vpack.c.bf16 %v673_v24, %v650_v14 }
  0xc2   : > { %v637_v28 = vpop.permute.xlu0 %636  ;;  %v1220_v29 = vpack.c.bf16 %v671_v23, %v648_v22  ;;  %v1221_v31 = vpack.c.bf16 %v672_v26, %v649_v25  ;;  %v670_v32 = vsel %vm669_vm9, %v660_v27, %v1718_v20  ;;  %vm1042_vm9 = vcmask 695296  }
  0xc3   : > { %v647_v33 = vsel %vm646_vm8, %v637_v28, %v1708_v11  ;;  %1330 = vmatprep.subr.bf16.mxu1 %v1222_v30  ;;  %vm1019_vm8 = vcmask 703488  }
  0xc4   : > { %v1219_v34 = vpack.c.bf16 %v670_v32, %v647_v33  ;;  %1289 = vmatprep.subr.bf16.mxu0 %v1220_v29  ;;  %1331 = vmatpush1.bf16.msra.mxu1 %v1221_v31 }
  0xc5   : > { %v1732_v35 = vpop.permute.xlu1 %1731 }
  0xc6   : > { %v1727_v36 = vpop.permute.xlu0 %1726  ;;  %1290 = vmatpush1.bf16.msra.mxu0 %v1219_v34  ;;  %v1734_v37 = vunpack.i.h.bf16 %v1732_v35  ;;  %v1733_v38 = vunpack.i.l.bf16 %v1732_v35 }
  0xc7   : > { %v1729_v39 = vunpack.i.h.bf16 %v1727_v36  ;;  %v1728_v40 = vunpack.i.l.bf16 %v1727_v36 }
  0xc8   : > { %v696_v43 = vsel %vm692_vm10, %v1733_v38, %v1734_v37 }
  0xc9   : > { %v1742_v41 = vpop.permute.xlu1 %1741  ;;  %v694_v47 = vsel %vm692_vm10, %v1728_v40, %v1729_v39  ;;  %v695_v50 = vsel %vm692_vm10, %v1729_v39, %v1733_v38 }
  0xca   : > { %v1737_v42 = vpop.permute.xlu0 %1736  ;;  %v1744_v44 = vunpack.i.h.bf16 %v1742_v41  ;;  %v1743_v45 = vunpack.i.l.bf16 %v1742_v41 }
  0xcb   : > { %v1739_v46 = vunpack.i.h.bf16 %v1737_v42  ;;  %v1738_v15 = vunpack.i.l.bf16 %v1737_v42 }
  0xcc   : > { %v719_v49 = vsel %vm715_vm11, %v1743_v45, %v1744_v44 }
  0xcd   : > { %v717_v48 = vsel %vm715_vm11, %v1738_v15, %v1739_v46  ;;  %v718_v51 = vsel %vm715_vm11, %v1739_v46, %v1743_v45  ;;  %v706_v52 = vpop.permute.xlu1 %705  ;;  %v1226_v55 = vpack.c.bf16 %v719_v49, %v696_v43 }
  0xce   : > { %v683_v53 = vpop.permute.xlu0 %682  ;;  %v1224_v54 = vpack.c.bf16 %v717_v48, %v694_v47  ;;  %v1225_v17 = vpack.c.bf16 %v718_v51, %v695_v50  ;;  %v716_v56 = vsel %vm715_vm11, %v706_v52, %v1738_v15 }
  0xcf   : > { %v693_v57 = vsel %vm692_vm10, %v683_v53, %v1728_v40  ;;  %1332 = vmatprep.subr.bf16.mxu1 %v1226_v55 }
  0xd0   : > { %v1223_v58 = vpack.c.bf16 %v716_v56, %v693_v57  ;;  %1291 = vmatprep.subr.bf16.mxu0 %v1224_v54  ;;  %1333 = vmatpush1.bf16.msra.mxu1 %v1225_v17 }
  0xd1   : > { %v1752_v59 = vpop.permute.xlu1 %1751 }
  0xd2   : > { %v1747_v60 = vpop.permute.xlu0 %1746  ;;  %1292 = vmatpush1.bf16.msra.mxu0 %v1223_v58  ;;  %v1754_v61 = vunpack.i.h.bf16 %v1752_v59  ;;  %v1753_v62 = vunpack.i.l.bf16 %v1752_v59 }
  0xd3   : > { %v1749_v63 = vunpack.i.h.bf16 %v1747_v60  ;;  %v1748_v0 = vunpack.i.l.bf16 %v1747_v60 }
  0xd4   : > { %v742_v2 = vsel %vm738_vm12, %v1753_v62, %v1754_v61 }
  0xd5   : > { %v740_v1 = vsel %vm738_vm12, %v1748_v0, %v1749_v63  ;;  %v741_v3 = vsel %vm738_vm12, %v1749_v63, %v1753_v62  ;;  %v1757_v4 = vpop.permute.xlu1 %1756  ;;  %v1230_v11 = vpack.c.bf16 %v2045_v9, %v742_v2 }
  0xd6   : > { %v729_v5 = vpop.permute.xlu0 %728  ;;  %v1228_v10 = vpack.c.bf16 %v2041_v7, %v740_v1  ;;  %v1229_v12 = vpack.c.bf16 %v2043_v8, %v741_v3  ;;  %v1759_v13 = vunpack.i.h.bf16 %v1757_v4  ;;  %v1758_v14 = vunpack.i.l.bf16 %v1757_v4 }
  0xd7   : > { %v739_v16 = vsel %vm738_vm12, %v729_v5, %v1748_v0  ;;  %1334 = vmatprep.subr.bf16.mxu1 %v1230_v11 }
  0xd8   : > { %v1227_v18 = vpack.c.bf16 %v2039_v6, %v739_v16  ;;  %1293 = vmatprep.subr.bf16.mxu0 %v1228_v10  ;;  %1335 = vmatpush1.bf16.msra.mxu1 %v1229_v12  ;;  %v768_v7 = vsel %vm766_vm13, %v1758_v14, %v1759_v13 }
  0xd9   : > { %v1767_v19 = vpop.permute.xlu1 %1766 }
  0xda   : > { %v1762_v20 = vpop.permute.xlu0 %1761  ;;  %1294 = vmatpush1.bf16.msra.mxu0 %v1227_v18  ;;  %v1769_v22 = vunpack.i.h.bf16 %v1767_v19  ;;  %v1768_v23 = vunpack.i.l.bf16 %v1767_v19 }
  0xdb   : > { %v1764_v9 = vunpack.i.h.bf16 %v1762_v20  ;;  %v1763_v24 = vunpack.i.l.bf16 %v1762_v20 }
  0xdc   : > { %v791_v8 = vsel %vm789_vm14, %v1768_v23, %v1769_v22 }
  0xdd   : > { %v757_v25 = vpop.permute.xlu1 %756  ;;  %v1232_v27 = vpack.c.bf16 %v791_v8, %v768_v7  ;;  %v770_v29 = vsel %vm766_vm13, %v1763_v24, %v1764_v9  ;;  %v769_v31 = vsel %vm766_vm13, %v1759_v13, %v1763_v24 }
  0xde   : > { %v1772_v26 = vpop.permute.xlu0 %1771  ;;  %v767_v37 = vsel %vm766_vm13, %v757_v25, %v1758_v14 }
  0xdf   : > { %v1774_v6 = vunpack.i.h.bf16 %v1772_v26  ;;  %v1773_v28 = vunpack.i.l.bf16 %v1772_v26  ;;  %1295 = vmatprep.subr.bf16.mxu0 %v1232_v27 }
  0xe1   : > { %v793_v30 = vsel %vm789_vm14, %v1773_v28, %v1774_v6  ;;  %v792_v32 = vsel %vm789_vm14, %v1769_v22, %v1773_v28  ;;  %v1777_v33 = vpop.permute.xlu1 %1776 }
  0xe2   : > { %v780_v34 = vpop.permute.xlu0 %779  ;;  %v1234_v35 = vpack.c.bf16 %v793_v30, %v770_v29  ;;  %v1233_v36 = vpack.c.bf16 %v792_v32, %v769_v31  ;;  %v1779_v38 = vunpack.i.h.bf16 %v1777_v33  ;;  %v1778_v39 = vunpack.i.l.bf16 %v1777_v33 }
  0xe3   : > { %v790_v40 = vsel %vm789_vm14, %v780_v34, %v1768_v23 }
  0xe4   : > { %v1231_v41 = vpack.c.bf16 %v790_v40, %v767_v37  ;;  %1336 = vmatprep.subr.bf16.mxu1 %v1234_v35  ;;  %v814_v46 = vsel %vm812_vm15, %v1778_v39, %v1779_v38 }
  0xe5   : > { %1337 = vmatpush1.bf16.msra.mxu1 %v1233_v36  ;;  %v1787_v42 = vpop.permute.xlu1 %1786 }
  0xe6   : > { %v1782_v43 = vpop.permute.xlu0 %1781  ;;  %1296 = vmatpush1.bf16.msra.mxu0 %v1231_v41  ;;  %v1789_v44 = vunpack.i.h.bf16 %v1787_v42  ;;  %v1788_v45 = vunpack.i.l.bf16 %v1787_v42 }
  0xe7   : > { %v1784_v15 = vunpack.i.h.bf16 %v1782_v43  ;;  %v1783_v47 = vunpack.i.l.bf16 %v1782_v43 }
  0xe8   : > { %v837_v48 = vsel %vm835_vm0, %v1788_v45, %v1789_v44 }
  0xe9   : > { %v803_v49 = vpop.permute.xlu1 %802  ;;  %v1236_v51 = vpack.c.bf16 %v837_v48, %v814_v46  ;;  %v816_v54 = vsel %vm812_vm15, %v1783_v47, %v1784_v15  ;;  %v815_v17 = vsel %vm812_vm15, %v1779_v38, %v1783_v47 }
  0xea   : > { %v1792_v50 = vpop.permute.xlu0 %1791  ;;  %v813_v61 = vsel %vm812_vm15, %v803_v49, %v1778_v39 }
  0xeb   : > { %v1794_v52 = vunpack.i.h.bf16 %v1792_v50  ;;  %v1793_v53 = vunpack.i.l.bf16 %v1792_v50  ;;  %1297 = vmatprep.subr.bf16.mxu0 %v1236_v51 }
  0xed   : > { %v839_v55 = vsel %vm835_vm0, %v1793_v53, %v1794_v52  ;;  %v838_v56 = vsel %vm835_vm0, %v1789_v44, %v1793_v53  ;;  %v1797_v57 = vpop.permute.xlu1 %1796 }
  0xee   : > { %v826_v58 = vpop.permute.xlu0 %825  ;;  %v1238_v59 = vpack.c.bf16 %v839_v55, %v816_v54  ;;  %v1237_v60 = vpack.c.bf16 %v838_v56, %v815_v17  ;;  %v1799_v62 = vunpack.i.h.bf16 %v1797_v57  ;;  %v1798_v63 = vunpack.i.l.bf16 %v1797_v57 }
  0xef   : > { %v836_v0 = vsel %vm835_vm0, %v826_v58, %v1788_v45 }
  0xf0   : > { %v1235_v1 = vpack.c.bf16 %v836_v0, %v813_v61  ;;  %1338 = vmatprep.subr.bf16.mxu1 %v1238_v59  ;;  %v860_v10 = vsel %vm858_vm1, %v1798_v63, %v1799_v62 }
  0xf1   : > { %1339 = vmatpush1.bf16.msra.mxu1 %v1237_v60  ;;  %v1807_v2 = vpop.permute.xlu1 %1806 }
  0xf2   : > { %v1802_v3 = vpop.permute.xlu0 %1801  ;;  %1298 = vmatpush1.bf16.msra.mxu0 %v1235_v1  ;;  %v1809_v4 = vunpack.i.h.bf16 %v1807_v2  ;;  %v1808_v5 = vunpack.i.l.bf16 %v1807_v2 }
  0xf3   : > { %v1804_v11 = vunpack.i.h.bf16 %v1802_v3  ;;  %v1803_v12 = vunpack.i.l.bf16 %v1802_v3 }
  0xf4   : > { %v883_v13 = vsel %vm881_vm2, %v1808_v5, %v1809_v4 }
  0xf5   : > { %v849_v14 = vpop.permute.xlu1 %848  ;;  %v1240_v18 = vpack.c.bf16 %v883_v13, %v860_v10  ;;  %v862_v22 = vsel %vm858_vm1, %v1803_v12, %v1804_v11  ;;  %v861_v7 = vsel %vm858_vm1, %v1799_v62, %v1803_v12 }
  0xf6   : > { %v1812_v16 = vpop.permute.xlu0 %1811  ;;  %v859_v27 = vsel %vm858_vm1, %v849_v14, %v1798_v63 }
  0xf7   : > { %v1814_v19 = vunpack.i.h.bf16 %v1812_v16  ;;  %v1813_v20 = vunpack.i.l.bf16 %v1812_v16  ;;  %1299 = vmatprep.subr.bf16.mxu0 %v1240_v18 }
  0xf9   : > { %v885_v23 = vsel %vm881_vm2, %v1813_v20, %v1814_v19  ;;  %v884_v9 = vsel %vm881_vm2, %v1809_v4, %v1813_v20  ;;  %v1817_v24 = vpop.permute.xlu1 %1816 }
  0xfa   : > { %v872_v8 = vpop.permute.xlu0 %871  ;;  %v1242_v25 = vpack.c.bf16 %v885_v23, %v862_v22  ;;  %v1241_v26 = vpack.c.bf16 %v884_v9, %v861_v7  ;;  %v1819_v6 = vunpack.i.h.bf16 %v1817_v24  ;;  %v1818_v28 = vunpack.i.l.bf16 %v1817_v24 }
  0xfb   : > { %v882_v29 = vsel %vm881_vm2, %v872_v8, %v1808_v5 }
  0xfc   : > { %v1239_v30 = vpack.c.bf16 %v882_v29, %v859_v27  ;;  %1340 = vmatprep.subr.bf16.mxu1 %v1242_v25  ;;  %v906_v35 = vsel %vm904_vm3, %v1818_v28, %v1819_v6 }
  0xfd   : > { %1341 = vmatpush1.bf16.msra.mxu1 %v1241_v26  ;;  %v1827_v31 = vpop.permute.xlu1 %1826 }
  0xfe   : > { %v1822_v32 = vpop.permute.xlu0 %1821  ;;  %1300 = vmatpush1.bf16.msra.mxu0 %v1239_v30  ;;  %v1829_v33 = vunpack.i.h.bf16 %v1827_v31  ;;  %v1828_v34 = vunpack.i.l.bf16 %v1827_v31 }
  0xff   : > { %v1824_v37 = vunpack.i.h.bf16 %v1822_v32  ;;  %v1823_v38 = vunpack.i.l.bf16 %v1822_v32 }
 0x100   : > { %v929_v36 = vsel %vm927_vm4, %v1828_v34, %v1829_v33 }
 0x101   : > { %v895_v39 = vpop.permute.xlu1 %894  ;;  %v1244_v40 = vpack.c.bf16 %v929_v36, %v906_v35  ;;  %v908_v45 = vsel %vm904_vm3, %v1823_v38, %v1824_v37  ;;  %v907_v15 = vsel %vm904_vm3, %v1819_v6, %v1823_v38 }
 0x102   : > { %v1832_v41 = vpop.permute.xlu0 %1831  ;;  %v905_v53 = vsel %vm904_vm3, %v895_v39, %v1818_v28 }
 0x103   : > { %v1834_v42 = vunpack.i.h.bf16 %v1832_v41  ;;  %v1833_v43 = vunpack.i.l.bf16 %v1832_v41  ;;  %1301 = vmatprep.subr.bf16.mxu0 %v1244_v40 }
 0x105   : > { %v1837_v44 = vpop.permute.xlu1 %1836  ;;  %v931_v46 = vsel %vm927_vm4, %v1833_v43, %v1834_v42  ;;  %v930_v47 = vsel %vm927_vm4, %v1829_v33, %v1833_v43 }
 0x106   : > { %v1839_v48 = vunpack.i.h.bf16 %v1837_v44  ;;  %v1838_v49 = vunpack.i.l.bf16 %v1837_v44  ;;  %v918_v50 = vpop.permute.xlu0 %917  ;;  %v1246_v51 = vpack.c.bf16 %v931_v46, %v908_v45  ;;  %v1245_v52 = vpack.c.bf16 %v930_v47, %v907_v15 }
 0x107   : > { %v928_v54 = vsel %vm927_vm4, %v918_v50, %v1828_v34  ;;  %v1945_v47 = vmov 0.0  }
 0x108   : > { %v1243_v55 = vpack.c.bf16 %v928_v54, %v905_v53  ;;  %1342 = vmatprep.subr.bf16.mxu1 %v1246_v51  ;;  %v952_v59 = vsel %vm950_vm5, %v1838_v49, %v1839_v48  ;;  %v1576_v54 = vcombine.low %v2113_v21, %v2113_v21 }
 0x109   : > { %1343 = vmatpush1.bf16.msra.mxu1 %v1245_v52  ;;  %v1847_v17 = vpop.permute.xlu1 %1846 }
 0x10a   : > { %v1849_v56 = vunpack.i.h.bf16 %v1847_v17  ;;  %v1848_v57 = vunpack.i.l.bf16 %v1847_v17  ;;  %v1842_v58 = vpop.permute.xlu0 %1841  ;;  %1302 = vmatpush1.bf16.msra.mxu0 %v1243_v55 }
 0x10b   : > { %v1844_v61 = vunpack.i.h.bf16 %v1842_v58  ;;  %v1843_v62 = vunpack.i.l.bf16 %v1842_v58 }
 0x10c   : > { %v975_v60 = vsel %vm973_vm6, %v1848_v57, %v1849_v56 }
 0x10d   : > { %v941_v63 = vpop.permute.xlu1 %940  ;;  %v1248_v0 = vpack.c.bf16 %v975_v60, %v952_v59  ;;  %v954_v5 = vsel %vm950_vm5, %v1843_v62, %v1844_v61  ;;  %v953_v11 = vsel %vm950_vm5, %v1839_v48, %v1843_v62 }
 0x10e   : > { %v1852_v1 = vpop.permute.xlu0 %1851  ;;  %v951_v20 = vsel %vm950_vm5, %v941_v63, %v1838_v49 }
 0x10f   : > { %v1854_v2 = vunpack.i.h.bf16 %v1852_v1  ;;  %v1853_v3 = vunpack.i.l.bf16 %v1852_v1  ;;  %1303 = vmatprep.subr.bf16.mxu0 %v1248_v0 }
 0x111   : > { %v1857_v4 = vpop.permute.xlu1 %1856  ;;  %v977_v10 = vsel %vm973_vm6, %v1853_v3, %v1854_v2  ;;  %v976_v12 = vsel %vm973_vm6, %v1849_v56, %v1853_v3 }
 0x112   : > { %v1859_v13 = vunpack.i.h.bf16 %v1857_v4  ;;  %v1858_v14 = vunpack.i.l.bf16 %v1857_v4  ;;  %v964_v16 = vpop.permute.xlu0 %963  ;;  %v1250_v18 = vpack.c.bf16 %v977_v10, %v954_v5  ;;  %v1249_v19 = vpack.c.bf16 %v976_v12, %v953_v11 }
 0x113   : > { %v974_v22 = vsel %vm973_vm6, %v964_v16, %v1848_v57 }
 0x114   : > { %v1247_v23 = vpack.c.bf16 %v974_v22, %v951_v20  ;;  %1344 = vmatprep.subr.bf16.mxu1 %v1250_v18  ;;  %v998_v25 = vsel %vm996_vm7, %v1858_v14, %v1859_v13 }
 0x115   : > { %1345 = vmatpush1.bf16.msra.mxu1 %v1249_v19  ;;  %v1867_v7 = vpop.permute.xlu1 %1866  ;;  %v1384_v19 = vld [vmem:[%s2014_s17 + $0x8] sm:$0xff] }
 0x116   : > { %v1869_v9 = vunpack.i.h.bf16 %v1867_v7  ;;  %v1868_v24 = vunpack.i.l.bf16 %v1867_v7  ;;  %v1862_v8 = vpop.permute.xlu0 %1861  ;;  %1304 = vmatpush1.bf16.msra.mxu0 %v1247_v23 }
 0x117   : > { %v1864_v27 = vunpack.i.h.bf16 %v1862_v8  ;;  %v1863_v6 = vunpack.i.l.bf16 %v1862_v8  ;;  %v1387_v8 = vunpack.c.l.bf16 %v1384_v19 }
 0x118   : > { %v1021_v26 = vsel %vm1019_vm8, %v1868_v24, %v1869_v9 }
 0x119   : > { %v987_v28 = vpop.permute.xlu1 %986  ;;  %v1252_v29 = vpack.c.bf16 %v1021_v26, %v998_v25  ;;  %v1000_v34 = vsel %vm996_vm7, %v1863_v6, %v1864_v27  ;;  %v999_v36 = vsel %vm996_vm7, %v1859_v13, %v1863_v6 }
 0x11a   : > { %v1872_v30 = vpop.permute.xlu0 %1871  ;;  %v997_v43 = vsel %vm996_vm7, %v987_v28, %v1858_v14  ;;  %v1383_v14 = vld [vmem:[%s2014_s17] sm:$0xff]  ;;  %v1388_v28 = vunpack.c.h.bf16 %v1384_v19 }
 0x11b   : > { %v1874_v31 = vunpack.i.h.bf16 %v1872_v30  ;;  %v1873_v32 = vunpack.i.l.bf16 %v1872_v30  ;;  %1305 = vmatprep.subr.bf16.mxu0 %v1252_v29  ;;  %v1385_v18 = vunpack.c.l.bf16 %v1383_v14  ;;  %v1386_v23 = vunpack.c.h.bf16 %v1383_v14 }
 0x11d   : > { %v1877_v33 = vpop.permute.xlu1 %1876  ;;  %v1023_v35 = vsel %vm1019_vm8, %v1873_v32, %v1874_v31  ;;  %v1022_v37 = vsel %vm1019_vm8, %v1869_v9, %v1873_v32  ;;  %v1415_v32 = vlaneseq }
 0x11e   : > { %v1879_v38 = vunpack.i.h.bf16 %v1877_v33  ;;  %v1878_v39 = vunpack.i.l.bf16 %v1877_v33  ;;  %v1010_v40 = vpop.permute.xlu0 %1009  ;;  %v1254_v41 = vpack.c.bf16 %v1023_v35, %v1000_v34  ;;  %v1253_v42 = vpack.c.bf16 %v1022_v37, %v999_v36 }
 0x11f   : > { %v1020_v44 = vsel %vm1019_vm8, %v1010_v40, %v1868_v24 }
 0x120   : > { %v1251_v45 = vpack.c.bf16 %v1020_v44, %v997_v43  ;;  %1346 = vmatprep.subr.bf16.mxu1 %v1254_v41  ;;  %v1044_v46 = vsel %vm1042_vm9, %v1878_v39, %v1879_v38 }
 0x121   : > { %1347 = vmatpush1.bf16.msra.mxu1 %v1253_v42  ;;  %v1033_v15 = vpop.permute.xlu1 %1032  ;;  %v1256_v48 = vpack.c.bf16 %v1945_v47, %v1044_v46  ;;  %v1413_v42 = vld [vmem:[%s395_s13] sm:$0xf] }
 0x122   : > { %v1043_v49 = vsel %vm1042_vm9, %v1033_v15, %v1878_v39  ;;  %v1882_v50 = vpop.permute.xlu0 %1881  ;;  %1306 = vmatpush1.bf16.msra.mxu0 %v1251_v45  ;;  %v1416_v39 = vshrl.u32 %v1415_v32, 7 }
 0x123   : > { %v1255_v51 = vpack.c.bf16 %v1945_v47, %v1043_v49  ;;  %v1884_v52 = vunpack.i.h.bf16 %v1882_v50  ;;  %v1883_v53 = vunpack.i.l.bf16 %v1882_v50  ;;  %1307 = vmatprep.subr.bf16.mxu0 %v1256_v48 }
 0x124   : > { %v1417_v41 = vsub.s32 0, %v1416_v39  ;;  %v1421_v43 = vsub.s32 1, %v1416_v39  ;;  %v1425_v44 = vsub.s32 2, %v1416_v39  ;;  %v1429_v15 = vsub.s32 3, %v1416_v39 }
 0x125   : > { %v1046_v55 = vsel %vm1042_vm9, %v1883_v53, %v1884_v52  ;;  %v1045_v17 = vsel %vm1042_vm9, %v1879_v38, %v1883_v53 }
 0x126   : > { %1308 = vmatpush1.bf16.msra.mxu0 %v1255_v51  ;;  %v1258_v56 = vpack.c.bf16 %v1945_v47, %v1046_v55  ;;  %v1257_v57 = vpack.c.bf16 %v1945_v47, %v1045_v17  ;;  %v1418_v46 = vrot.slane %v1413_v42, %v1417_v41  ;;  %v1422_v49 = vrot.slane %v1413_v42, %v1421_v43 }
 0x127   : > { %v1426_v53 = vrot.slane %v1413_v42, %v1425_v44 }
 0x128   : > { %1348 = vmatprep.subr.bf16.mxu1 %v1258_v56 }
 0x129   : > { %1314 = vmatmul.mubr.bf16.vlgmr.msra.gmra.mrb[0].mxu0 %v1576_v54  ;;  %1349 = vmatpush1.bf16.msra.mxu1 %v1257_v57  ;;  %v1430_v57 = vrot.slane %v1413_v42, %v1429_v15 }
 0x12c   : > { %1355 = vmatmul.mubr.bf16.vlgmr.msra.gmra.mrb[0].mxu1 %v1576_v54 }
 0x133   : > { %v1272_v58 = vpop.permute.xlu0 %1271 }
 0x1fc   : > { %v1315_v59 = vpop.f32.mrb[0].mxu0 }
 0x1fd   : > { %v1316_v60 = vadd.f32 %v1315_v59, %v1272_v58  ;;  %v1317_v61 = vpop.f32.mrb[1].mxu0 }
 0x1fe   : > { %v1318_v62 = vadd.f32 %v1317_v61, %v1272_v58  ;;  %v1319_v63 = vpop.f32.mrb[2].mxu0 }
 0x1ff   : > { %v1367_v0 = vmul.f32 1.442695, %v1316_v60  ;;  %v1320_v21 = vpop.f32.mrb[3].mxu0  ;;  %v1356_v1 = vpop.f32.mrb[0].mxu1  ;;  %vm1363_vm10 = vcmp.gt.f32.partialorder %v1316_v60, 0.0 }
 0x200   : > { %v1369_v2 = vmul.f32 1.442695, %v1318_v62  ;;  %v1357_v3 = vadd.f32 %v1356_v1, %v1272_v58  ;;  %v1358_v4 = vpop.f32.mrb[1].mxu1  ;;  %vm1364_vm11 = vcmp.gt.f32.partialorder %v1318_v62, 0.0 }
 0x201   : > { %1894 = vpow2.f32 %v1367_v0  ;;  %v1359_v5 = vadd.f32 %v1358_v4, %v1272_v58  ;;  %v1360_v10 = vpop.f32.mrb[2].mxu1 }
 0x202   : > { %1896 = vpow2.f32 %v1369_v2  ;;  %v1371_v11 = vmul.f32 1.442695, %v1357_v3  ;;  %v1361_v12 = vpop.f32.mrb[3].mxu1  ;;  %vm1365_vm12 = vcmp.gt.f32.partialorder %v1357_v3, 0.0 }
 0x203   : > { %v1373_v13 = vmul.f32 1.442695, %v1359_v5  ;;  %vm1366_vm13 = vcmp.gt.f32.partialorder %v1359_v5, 0.0 }
 0x204   : > { %1898 = vpow2.f32 %v1371_v11 }
 0x205   : > { %1900 = vpow2.f32 %v1373_v13 }
 0x20b   : > { %v1895_v16 = vpop.eup %1894 }
 0x20c   : > { %v1897_v20 = vpop.eup %1896  ;;  %v1578_v22 = vadd.f32 -1.0, %v1895_v16 }
 0x20d   : > { %v1579_v7 = vadd.f32 -1.0, %v1897_v20 }
 0x20e   : > { %v1899_v9 = vpop.eup %1898  ;;  %v1379_v24 = vsel %vm1363_vm10, %v1316_v60, %v1578_v22 }
 0x20f   : > { %v1901_v25 = vpop.eup %1900  ;;  %v1389_v26 = vadd.f32 %v1385_v18, %v1379_v24  ;;  %v1380_v27 = vsel %vm1364_vm11, %v1318_v62, %v1579_v7  ;;  %v1580_v6 = vadd.f32 -1.0, %v1899_v9 }
 0x210   : > { %v1390_v29 = vadd.f32 %v1386_v23, %v1380_v27  ;;  %v1581_v30 = vadd.f32 -1.0, %v1901_v25 }
 0x211   : > { %v1397_v31 = vmul.f32 1.442695, %v1389_v26  ;;  %v1381_v33 = vsel %vm1365_vm12, %v1357_v3, %v1580_v6  ;;  %vm1393_vm14 = vcmp.gt.f32.partialorder %v1389_v26, 0.0 }
 0x212   : > { %v1399_v34 = vmul.f32 1.442695, %v1390_v29  ;;  %v1391_v35 = vadd.f32 %v1387_v8, %v1381_v33  ;;  %v1382_v36 = vsel %vm1366_vm13, %v1359_v5, %v1581_v30  ;;  %vm1394_vm15 = vcmp.gt.f32.partialorder %v1390_v29, 0.0 }
 0x213   : > { %1902 = vpow2.f32 %v1397_v31  ;;  %v1392_v37 = vadd.f32 %v1388_v28, %v1382_v36 }
 0x214   : > { %1904 = vpow2.f32 %v1399_v34  ;;  %v1401_v38 = vmul.f32 1.442695, %v1391_v35  ;;  %vm1395_vm0 = vcmp.gt.f32.partialorder %v1391_v35, 0.0 }
 0x215   : > { %v1403_v40 = vmul.f32 1.442695, %v1392_v37  ;;  %vm1396_vm1 = vcmp.gt.f32.partialorder %v1392_v37, 0.0 }
 0x216   : > { %1906 = vpow2.f32 %v1401_v38 }
 0x217   : > { %1908 = vpow2.f32 %v1403_v40 }
 0x21d   : > { %v1903_v45 = vpop.eup %1902 }
 0x21e   : > { %v1905_v47 = vpop.eup %1904  ;;  %v1582_v48 = vadd.f32 -1.0, %v1903_v45 }
 0x21f   : > { %v1583_v50 = vadd.f32 -1.0, %v1905_v47 }
 0x220   : > { %v1907_v51 = vpop.eup %1906  ;;  %v1409_v52 = vsel %vm1393_vm14, %v1389_v26, %v1582_v48 }
 0x221   : > { %v1909_v54 = vpop.eup %1908  ;;  %v1435_v55 = vmul.f32 %v1418_v46, %v1409_v52  ;;  %v1410_v17 = vsel %vm1394_vm15, %v1390_v29, %v1583_v50  ;;  %v1584_v56 = vadd.f32 -1.0, %v1907_v51 }
 0x222   : > { %v1436_v58 = vmul.f32 %v1422_v49, %v1410_v17  ;;  %v1585_v59 = vadd.f32 -1.0, %v1909_v54 }
 0x223   : > { %1439 = vst [vmem:[%s2023_s8] sm:$0xff] %v1435_v55  ;;  %v1411_v60 = vsel %vm1395_vm0, %v1391_v35, %v1584_v56 }
 0x224   : > { %1440 = vst [vmem:[%s2023_s8 + $0x8] sm:$0xff] %v1436_v58  ;;  %v1437_v61 = vmul.f32 %v1426_v53, %v1411_v60  ;;  %v1412_v62 = vsel %vm1396_vm1, %v1392_v37, %v1585_v59 }
 0x225   : > { %v1438_v63 = vmul.f32 %v1430_v57, %v1412_v62 }
 0x226   : > { %1441 = vst [vmem:[%s2023_s8 + $0x10] sm:$0xff] %v1437_v61 }
 0x227   : > { %1442 = vst [vmem:[%s2023_s8 + $0x18] sm:$0xff] %v1438_v63 }
 0x228 PF: > { %1445 = sbr.rel (!%p2028_p10) target bundleno = 559 (0x22f), region = 56  ;;  %v1946_v0 = vmov (%p2028_p10), 0.0  }
 0x229   : > { %1446 = vst [vmem:[%s2023_s8] sm:$0xff] (%p2028_p10), %v1946_v0  ;;  %1447 = vst [vmem:[%s2023_s8 + $0x8] sm:$0xff] (%p2028_p10), %v1946_v0 }
 0x22a   : > { %1448 = vst [vmem:[%s2023_s8 + $0x10] sm:$0xff] (%p2028_p10), %v1946_v0  ;;  %1449 = vst [vmem:[%s2023_s8 + $0x18] sm:$0xff] (%p2028_p10), %v1946_v0 }
 0x22f PF: > { %s17_s24 = sadd.s32 1, %s1916_s24  }
 0x230   : > { %p14_p11 = scmp.ge.s32.totalorder %s17_s24, 5  }
 0x232   :  { %16 = sbr.rel (!%p14_p11) target bundleno = 1 (0x1), region = 98 }

// kernel: down_transition_forward.4
= control target key start
LH: loop header
LB: loop body
LE: loop exit
PB: predicated region body
PF: predicated region fallthrough
CT: control target
= control target key end

     0   :  { %s1894_s21 = smov 0   ;;  %s2124_s0 = inlined_call_operand.vmem [shape: bf16[8,1536], index: 0, kind: input, shape index: {}, may-alias: {0,1,2}]   ;;  %s2125_s1 = inlined_call_operand.vmem [shape: bf16[8,1536], index: 1, kind: input, shape index: {}, may-alias: {0,1,2}]   ;;  %s2126_s2 = inlined_call_operand.vmem [shape: bf16[8,1536], index: 2, kind: input, shape index: {}, may-alias: {0,1,2}]   ;;  %s2127_s3 = inlined_call_operand.vmem [shape: bf16[8,256], index: 3, kind: input, shape index: {}]   ;;  %s2128_s4 = inlined_call_operand.vmem [shape: f32[8,1], index: 4, kind: input, shape index: {}]   ;;  %s2129_s5 = inlined_call_operand.vmem [shape: f32[1,1536], index: 5, kind: input, shape index: {}]   ;;  %s2130_s6 = inlined_call_operand.vmem [shape: bf16[8,1536], index: 6, kind: output, shape index: {}]  }
   0x1 LB: > { %s1473_s22 = sadd.s32 4294967295, %s1828_s21   ;;  %p1479_p0 = scmp.ge.s32.totalorder %s1828_s21, 1  ;;  %s1828_s21 = sphi %s1894_s21, %s16_s21  }
   0x2   : > { %p269_p1 = scmp.lt.s32.totalorder %s1828_s21, 4 }
   0x4   : > { %p270_p2 = pnand %p1479_p0, %p269_p1 }
   0x5   : > { %s1480_s23 = sadd.s32 (!%p270_p2), 4294967295, %s1473_s22  ;;  %s1483_s24 = sshll.u32 (!%p270_p2), %s1473_s22, 2 }
   0x6   : > { %273 = sbr.rel (%p270_p2) target bundleno = 543 (0x21f), region = 44  ;;  %p320_p3 = scmp.gt.s32.totalorder (!%p270_p2), %s1480_s23, 0 }
   0x7   : > { %p332_p4 = scmp.lt.s32.totalorder (!%p270_p2), %s1483_s24, 11  ;;  %s337_s25 = sadd.s32 (!%p270_p2), 1, %s1473_s22 }
   0x8   : > { %p361_p5 = scmp.ge.s32.totalorder (!%p270_p2), %s1473_s22, 1  ;;  %p338_p6 = scmp.lt.s32.totalorder (!%p270_p2), %s337_s25, 2 }
   0x9   : > { %p362_p9 = scmp.lt.s32.totalorder (!%p270_p2), %s1473_s22, 2 }
   0xb   : > { %p1921_p10 = pnand (!%p270_p2), %p362_p9, %p361_p5 }
   0xd   : > { %s2133_s23 = smov (!%p320_p3, %s1480_s23), 0  ;;  %s2135_s24 = smov (!%p332_p4, %s1483_s24), 11 }
   0xe   : > { %s1481_s26 = sshll.u32 %s2133_s23, 2  ;;  %s1484_s27 = sshll.u32 %s2135_s24, 2  ;;  %vm414_vm0 = vcmask (!%p1921_p10), 351232   ;;  %vm437_vm1 = vcmask (!%p1921_p10), 343040   ;;  %vm460_vm2 = vcmask (!%p1921_p10), 334848   ;;  %vm483_vm3 = vcmask (!%p1921_p10), 302080  }
   0xf   : > { %p323_p7 = scmp.lt.s32.totalorder %s1481_s26, 11  ;;  %s335_s30 = scalar_lea.vmem %s2125_s1, %s1484_s27  ;;  %vm506_vm4 = vcmask (!%p1921_p10), 293888   ;;  %vm529_vm5 = vcmask (!%p1921_p10), 285696   ;;  %vm552_vm6 = vcmask (!%p1921_p10), 252928   ;;  %vm575_vm7 = vcmask (!%p1921_p10), 244736  }
  0x10   : > { %s352_s9 = scalar_lea.vmem %s2129_s5, %s2135_s24  ;;  %s2139_s25 = smov (!%p338_p6, %s337_s25), 2  ;;  %v368_v0 = vld [vmem:[%s335_s30] sm:$0xff] (!%p1921_p10)  ;;  %v369_v1 = vld [vmem:[%s335_s30 + $0x8] sm:$0xff] (!%p1921_p10)  ;;  %vm598_vm8 = vcmask (!%p1921_p10), 236544   ;;  %vm621_vm9 = vcmask (!%p1921_p10), 56320   ;;  %vm644_vm10 = vcmask (!%p1921_p10), 48128  }
  0x11   : > { %s2137_s26 = smov (!%p323_p7, %s1481_s26), 11  ;;  %s1915_s13 = scalar_lea.vmem %s2130_s6, %s1484_s27  ;;  %v1491_v2 = vcombine.low (!%p1921_p10), %v368_v0, %v368_v0  ;;  %v1492_v3 = vcombine.high (!%p1921_p10), %v368_v0, %v368_v0  ;;  %v1493_v4 = vcombine.low (!%p1921_p10), %v369_v1, %v369_v1  ;;  %v1494_v5 = vcombine.high (!%p1921_p10), %v369_v1, %v369_v1 }
  0x12   : > { %s1482_s10 = sshll.u32 %s2137_s26, 2  ;;  %s1485_s17 = sshll.u32 %s2139_s25, 2  ;;  %vm667_vm11 = vcmask (!%p1921_p10), 39936   ;;  %vm690_vm12 = vcmask (!%p1921_p10), 7168   ;;  %vm718_vm13 = vcmask (!%p1921_p10), 1039360   ;;  %vm741_vm14 = vcmask (!%p1921_p10), 1006592  }
  0x13   : > { %s326_s16 = scalar_lea.vmem %s2124_s0, %s1482_s10  ;;  %p341_p8 = scmp.lt.s32.totalorder %s1485_s17, 11  ;;  %v1932_v6 = vunpack.c.l.bf16 (!%p1921_p10), %v1491_v2  ;;  %v1934_v7 = vunpack.c.l.bf16 (!%p1921_p10), %v1492_v3  ;;  %v1936_v8 = vunpack.c.l.bf16 (!%p1921_p10), %v1493_v4  ;;  %v1938_v9 = vunpack.c.l.bf16 (!%p1921_p10), %v1494_v5 }
  0x14   : > { %366 = sbr.rel (%p1921_p10) target bundleno = 536 (0x218), region = 48  ;;  %s1830_s22 = smov (!%p1921_p10), 42   ;;  %v1810_v12 = vld [vmem:[%s326_s16 + $0xc] ss:$0 sps:$4 sm:$0xff] (!%p1921_p10)   ;;  %vm764_vm15 = vcmask (!%p1921_p10), 998400  }
  0x15   : > { %s2141_s17 = smov (!%p341_p8, %s1485_s17), 11  ;;  %v1555_v10 = vpack.i.bf16 (!%p1921_p10), %v1934_v7, %v1932_v6  ;;  %s1831_s25 = smov (!%p1921_p10), 43   ;;  %v1560_v11 = vpack.i.bf16 (!%p1921_p10), %v1938_v9, %v1936_v8  ;;  %v393_v13 = vunpack.c.l.bf16 (!%p1921_p10), %v1810_v12  ;;  %v1947_v15 = vpack.i.bf16 (!%p1921_p10), %v1936_v8, %v1934_v7 }
  0x16   : > { %s1486_s19 = sshll.u32 %s2141_s17, 2  ;;  %s1832_s27 = smov (!%p1921_p10), 41  }
  0x17   : > { %s1928_s26 = scalar_lea.vmem %s2126_s2, %s1486_s19  ;;  %1556 = vrot.lane.b32.xlu1 (!%p1921_p10), %v1555_v10, %s1830_s22  ;;  %1546 = vrot.lane.b32.xlu0 (!%p1921_p10), %v1555_v10, %s1831_s25  ;;  %s1833_s28 = smov (!%p1921_p10), 37  }
  0x18   : > { %s1834_s29 = smov (!%p1921_p10), 36   ;;  %s1835_s30 = smov (!%p1921_p10), 35   ;;  %v1811_v14 = vld [vmem:[%s1928_s26] ss:$0 sps:$4 sm:$0xff] (!%p1921_p10)  }
  0x19   : > { %s1836_s7 = smov (!%p1921_p10), 31   ;;  %s1837_s8 = smov (!%p1921_p10), 30   ;;  %v398_v16 = vunpack.c.l.bf16 (!%p1921_p10), %v1811_v14 }
  0x1a   : > { %s1838_s10 = smov (!%p1921_p10), 29   ;;  %s1839_s11 = smov (!%p1921_p10), 7  }
  0x1b   : > { %1561 = vrot.lane.b32.xlu1 %v1560_v11, %s1830_s22  ;;  %1551 = vrot.lane.b32.xlu0 %v1560_v11, %s1831_s25  ;;  %s1840_s12 = smov 6   ;;  %s1841_s14 = smov 5   ;;  %v1951_v17 = vpack.i.bf16 %v398_v16, %v1938_v9 }
  0x1c   : > { %s1842_s15 = smov 1   ;;  %s1843_s16 = smov 127  }
  0x1d   : > { %s1844_s17 = smov 123   ;;  %s1845_s19 = smov 122  }
  0x1e   : > { %s1846_s20 = smov 121   ;;  %s1847_s23 = smov 99  }
  0x1f   : > { %427 = vrot.lane.b32.xlu1 %v393_v13, %s1830_s22  ;;  %404 = vrot.lane.b32.xlu0 %v393_v13, %s1831_s25  ;;  %s1848_s26 = smov 98   ;;  %s1849_s22 = smov 97  }
  0x20   : > { %s1850_s25 = smov 93  }
  0x23   : > { %1571 = vrot.lane.b32.xlu1 %v1560_v11, %s1832_s27  ;;  %1566 = vrot.lane.b32.xlu0 %v1555_v10, %s1832_s27 }
  0x27   : > { %1581 = vrot.lane.b32.xlu1 %v1560_v11, %s1833_s28  ;;  %1576 = vrot.lane.b32.xlu0 %v1555_v10, %s1833_s28 }
  0x2b   : > { %473 = vrot.lane.b32.xlu1 %v393_v13, %s1833_s28  ;;  %450 = vrot.lane.b32.xlu0 %v393_v13, %s1832_s27  ;;  %s1851_s27 = smov 92   ;;  %s1852_s28 = smov 91  }
  0x2f   : > { %1591 = vrot.lane.b32.xlu1 %v1560_v11, %s1834_s29  ;;  %1586 = vrot.lane.b32.xlu0 %v1555_v10, %s1834_s29 }
  0x33   : > { %1601 = vrot.lane.b32.xlu1 %v1560_v11, %s1835_s30  ;;  %1596 = vrot.lane.b32.xlu0 %v1555_v10, %s1835_s30 }
  0x37   : > { %519 = vrot.lane.b32.xlu1 %v393_v13, %s1835_s30  ;;  %496 = vrot.lane.b32.xlu0 %v393_v13, %s1834_s29  ;;  %s1853_s29 = smov 87   ;;  %s1854_s30 = smov 86  }
  0x3b   : > { %1611 = vrot.lane.b32.xlu1 %v1560_v11, %s1836_s7  ;;  %1606 = vrot.lane.b32.xlu0 %v1555_v10, %s1836_s7 }
  0x3f   : > { %1621 = vrot.lane.b32.xlu1 %v1560_v11, %s1837_s8  ;;  %1616 = vrot.lane.b32.xlu0 %v1555_v10, %s1837_s8 }
  0x43   : > { %565 = vrot.lane.b32.xlu1 %v393_v13, %s1837_s8  ;;  %542 = vrot.lane.b32.xlu0 %v393_v13, %s1836_s7 }
  0x47   : > { %1631 = vrot.lane.b32.xlu1 %v1560_v11, %s1838_s10  ;;  %1626 = vrot.lane.b32.xlu0 %v1555_v10, %s1838_s10 }
  0x4b   : > { %1641 = vrot.lane.b32.xlu1 %v1560_v11, %s1839_s11  ;;  %1636 = vrot.lane.b32.xlu0 %v1555_v10, %s1839_s11 }
  0x4f   : > { %611 = vrot.lane.b32.xlu1 %v393_v13, %s1839_s11  ;;  %588 = vrot.lane.b32.xlu0 %v393_v13, %s1838_s10  ;;  %s1855_s10 = smov 85  }
  0x53   : > { %1651 = vrot.lane.b32.xlu1 %v1560_v11, %s1840_s12  ;;  %1646 = vrot.lane.b32.xlu0 %v1555_v10, %s1840_s12 }
  0x57   : > { %1661 = vrot.lane.b32.xlu1 %v1560_v11, %s1841_s14  ;;  %1656 = vrot.lane.b32.xlu0 %v1555_v10, %s1841_s14 }
  0x5b   : > { %657 = vrot.lane.b32.xlu1 %v393_v13, %s1841_s14  ;;  %634 = vrot.lane.b32.xlu0 %v393_v13, %s1840_s12 }
  0x5f   : > { %1671 = vrot.lane.b32.xlu1 %v1560_v11, %s1842_s15  ;;  %1666 = vrot.lane.b32.xlu0 %v1555_v10, %s1842_s15 }
  0x63   : > { %1676 = vrot.lane.b32.xlu1 %v1947_v15, %s1843_s16  ;;  %680 = vrot.lane.b32.xlu0 %v393_v13, %s1842_s15 }
  0x67   : > { %1686 = vrot.lane.b32.xlu1 %v1947_v15, %s1844_s17  ;;  %1681 = vrot.lane.b32.xlu0 %v1951_v17, %s1843_s16 }
  0x6b   : > { %708 = vrot.lane.b32.xlu1 %v1932_v6, %s1843_s16  ;;  %1691 = vrot.lane.b32.xlu0 %v1951_v17, %s1844_s17 }
  0x6f   : > { %1696 = vrot.lane.b32.xlu1 %v1947_v15, %s1845_s19  ;;  %731 = vrot.lane.b32.xlu0 %v1932_v6, %s1844_s17 }
  0x73   : > { %1706 = vrot.lane.b32.xlu1 %v1947_v15, %s1846_s20  ;;  %1701 = vrot.lane.b32.xlu0 %v1951_v17, %s1845_s19 }
  0x77   : > { %754 = vrot.lane.b32.xlu1 %v1932_v6, %s1845_s19  ;;  %1711 = vrot.lane.b32.xlu0 %v1951_v17, %s1846_s20 }
  0x7b   : > { %1716 = vrot.lane.b32.xlu1 %v1947_v15, %s1847_s23  ;;  %777 = vrot.lane.b32.xlu0 %v1932_v6, %s1846_s20 }
  0x7f   : > { %1726 = vrot.lane.b32.xlu1 %v1947_v15, %s1848_s26  ;;  %1721 = vrot.lane.b32.xlu0 %v1951_v17, %s1847_s23 }
  0x83   : > { %800 = vrot.lane.b32.xlu1 %v1932_v6, %s1847_s23  ;;  %1731 = vrot.lane.b32.xlu0 %v1951_v17, %s1848_s26 }
  0x87   : > { %1736 = vrot.lane.b32.xlu1 %v1947_v15, %s1849_s22  ;;  %823 = vrot.lane.b32.xlu0 %v1932_v6, %s1848_s26 }
  0x89   : > { %v1557_v18 = vpop.permute.xlu1 %1556  ;;  %v1547_v19 = vpop.permute.xlu0 %1546 }
  0x8a   : > { %v1559_v20 = vunpack.i.h.bf16 %v1557_v18  ;;  %v1558_v21 = vunpack.i.l.bf16 %v1557_v18  ;;  %v1549_v22 = vunpack.i.h.bf16 %v1547_v19  ;;  %v1548_v23 = vunpack.i.l.bf16 %v1547_v19 }
  0x8b   : > { %1746 = vrot.lane.b32.xlu1 %v1947_v15, %s1850_s25  ;;  %1741 = vrot.lane.b32.xlu0 %v1951_v17, %s1849_s22 }
  0x8c   : > { %v416_v24 = vsel %vm414_vm0, %v1548_v23, %v1549_v22  ;;  %v439_v25 = vsel %vm437_vm1, %v1558_v21, %v1559_v20 }
  0x8d   : > { %v1562_v26 = vpop.permute.xlu1 %1561  ;;  %v1552_v27 = vpop.permute.xlu0 %1551  ;;  %v1156_v28 = vpack.c.bf16 %v439_v25, %v416_v24 }
  0x8e   : > { %v1564_v29 = vunpack.i.h.bf16 %v1562_v26  ;;  %v1563_v30 = vunpack.i.l.bf16 %v1562_v26  ;;  %v1554_v31 = vunpack.i.h.bf16 %v1552_v27  ;;  %v1553_v32 = vunpack.i.l.bf16 %v1552_v27 }
  0x8f   : > { %1233 = vmatprep.subr.bf16.mxu0 %v1156_v28  ;;  %846 = vrot.lane.b32.xlu1 %v1932_v6, %s1849_s22 }
  0x90   : > { %1751 = vrot.lane.b32.xlu0 %v1951_v17, %s1850_s25  ;;  %v418_v33 = vsel %vm414_vm0, %v1553_v32, %v1554_v31  ;;  %v441_v34 = vsel %vm437_vm1, %v1563_v30, %v1564_v29  ;;  %v417_v35 = vsel %vm414_vm0, %v1549_v22, %v1553_v32  ;;  %v440_v36 = vsel %vm437_vm1, %v1559_v20, %v1563_v30 }
  0x91   : > { %v428_v37 = vpop.permute.xlu1 %427  ;;  %v405_v38 = vpop.permute.xlu0 %404  ;;  %v1158_v39 = vpack.c.bf16 %v441_v34, %v418_v33  ;;  %v1157_v40 = vpack.c.bf16 %v440_v36, %v417_v35 }
  0x92   : > { %v438_v41 = vsel %vm437_vm1, %v428_v37, %v1558_v21  ;;  %v415_v42 = vsel %vm414_vm0, %v405_v38, %v1548_v23  ;;  %v2006_v21 = vld [vmem:[%s2127_s3] sm:$0xff]  ;;  %vm787_vm0 = vcmask 990208   ;;  %vm810_vm1 = vcmask 809984  }
  0x93   : > { %1274 = vmatprep.subr.bf16.mxu1 %v1158_v39  ;;  %1756 = vrot.lane.b32.xlu1 %v1947_v15, %s1851_s27  ;;  %v1155_v43 = vpack.c.bf16 %v438_v41, %v415_v42  ;;  %v1497_v27 = vcombine.high %v2006_v21, %v2006_v21 }
  0x94   : > { %869 = vrot.lane.b32.xlu0 %v1932_v6, %s1850_s25  ;;  %1275 = vmatpush1.bf16.msra.mxu1 %v1157_v40 }
  0x95   : > { %v1572_v44 = vpop.permute.xlu1 %1571  ;;  %1234 = vmatpush1.bf16.msra.mxu0 %v1155_v43  ;;  %v1567_v45 = vpop.permute.xlu0 %1566  ;;  %1265 = vmatprep.mubr.bf16.mxu0 %v1497_v27  ;;  %v1856_v43 = vmov 0  }
  0x96   : > { %v1574_v46 = vunpack.i.h.bf16 %v1572_v44  ;;  %v1573_v47 = vunpack.i.l.bf16 %v1572_v44  ;;  %v1569_v48 = vunpack.i.h.bf16 %v1567_v45  ;;  %v1568_v49 = vunpack.i.l.bf16 %v1567_v45  ;;  %1306 = vmatprep.mubr.bf16.mxu1 %v1497_v27  ;;  %1805 = vset.pattern.permute.xlu0 %v1856_v43 }
  0x97   : > { %1766 = vrot.lane.b32.xlu1 %v1947_v15, %s1852_s28 }
  0x98   : > { %1761 = vrot.lane.b32.xlu0 %v1951_v17, %s1851_s27  ;;  %v464_v52 = vsel %vm460_vm2, %v1573_v47, %v1574_v46  ;;  %v462_v57 = vsel %vm460_vm2, %v1568_v49, %v1569_v48  ;;  %v463_v60 = vsel %vm460_vm2, %v1569_v48, %v1573_v47 }
  0x99   : > { %v1582_v50 = vpop.permute.xlu1 %1581  ;;  %v1577_v51 = vpop.permute.xlu0 %1576 }
  0x9a   : > { %v1584_v53 = vunpack.i.h.bf16 %v1582_v50  ;;  %v1583_v54 = vunpack.i.l.bf16 %v1582_v50  ;;  %v1579_v55 = vunpack.i.h.bf16 %v1577_v51  ;;  %v1578_v56 = vunpack.i.l.bf16 %v1577_v51 }
  0x9b   : > { %892 = vrot.lane.b32.xlu1 %v1932_v6, %s1851_s27 }
  0x9c   : > { %1771 = vrot.lane.b32.xlu0 %v1951_v17, %s1852_s28  ;;  %v487_v58 = vsel %vm483_vm3, %v1583_v54, %v1584_v53  ;;  %v485_v59 = vsel %vm483_vm3, %v1578_v56, %v1579_v55  ;;  %v486_v61 = vsel %vm483_vm3, %v1579_v55, %v1583_v54 }
  0x9d   : > { %v474_v62 = vpop.permute.xlu1 %473  ;;  %v451_v63 = vpop.permute.xlu0 %450  ;;  %v1162_v0 = vpack.c.bf16 %v487_v58, %v464_v52  ;;  %v1160_v1 = vpack.c.bf16 %v485_v59, %v462_v57  ;;  %v1161_v2 = vpack.c.bf16 %v486_v61, %v463_v60 }
  0x9e   : > { %v484_v3 = vsel %vm483_vm3, %v474_v62, %v1578_v56  ;;  %v461_v4 = vsel %vm460_vm2, %v451_v63, %v1568_v49  ;;  %v1220_v49 = vld [vmem:[%s2128_s4] sm:$0xff]  ;;  %vm833_vm2 = vcmask 801792   ;;  %vm856_vm3 = vcmask 793600  }
  0x9f   : > { %v1159_v5 = vpack.c.bf16 %v484_v3, %v461_v4  ;;  %1776 = vrot.lane.b32.xlu1 %v1947_v15, %s1853_s29  ;;  %1276 = vmatprep.subr.bf16.mxu1 %v1162_v0 }
  0xa0   : > { %915 = vrot.lane.b32.xlu0 %v1932_v6, %s1852_s28  ;;  %1235 = vmatprep.subr.bf16.mxu0 %v1160_v1 }
  0xa1   : > { %1277 = vmatpush1.bf16.msra.mxu1 %v1161_v2  ;;  %v1592_v10 = vpop.permute.xlu1 %1591  ;;  %v1587_v11 = vpop.permute.xlu0 %1586  ;;  %1236 = vmatpush1.bf16.msra.mxu0 %v1159_v5 }
  0xa2   : > { %v1594_v12 = vunpack.i.h.bf16 %v1592_v10  ;;  %v1593_v13 = vunpack.i.l.bf16 %v1592_v10  ;;  %v1589_v14 = vunpack.i.h.bf16 %v1587_v11  ;;  %v1588_v16 = vunpack.i.l.bf16 %v1587_v11 }
  0xa3   : > { %1786 = vrot.lane.b32.xlu1 %v1947_v15, %s1854_s30 }
  0xa4   : > { %1781 = vrot.lane.b32.xlu0 %v1951_v17, %s1853_s29  ;;  %v510_v20 = vsel %vm506_vm4, %v1593_v13, %v1594_v12  ;;  %v508_v26 = vsel %vm506_vm4, %v1588_v16, %v1589_v14  ;;  %v509_v30 = vsel %vm506_vm4, %v1589_v14, %v1593_v13 }
  0xa5   : > { %v1602_v18 = vpop.permute.xlu1 %1601  ;;  %v1597_v19 = vpop.permute.xlu0 %1596 }
  0xa6   : > { %v1604_v22 = vunpack.i.h.bf16 %v1602_v18  ;;  %v1603_v23 = vunpack.i.l.bf16 %v1602_v18  ;;  %v1599_v24 = vunpack.i.h.bf16 %v1597_v19  ;;  %v1598_v25 = vunpack.i.l.bf16 %v1597_v19 }
  0xa7   : > { %938 = vrot.lane.b32.xlu1 %v1932_v6, %s1853_s29 }
  0xa8   : > { %1791 = vrot.lane.b32.xlu0 %v1951_v17, %s1854_s30  ;;  %v531_v28 = vsel %vm529_vm5, %v1598_v25, %v1599_v24  ;;  %v533_v29 = vsel %vm529_vm5, %v1603_v23, %v1604_v22  ;;  %v532_v31 = vsel %vm529_vm5, %v1599_v24, %v1603_v23 }
  0xa9   : > { %v520_v32 = vpop.permute.xlu1 %519  ;;  %v497_v33 = vpop.permute.xlu0 %496  ;;  %v1164_v34 = vpack.c.bf16 %v531_v28, %v508_v26  ;;  %v1166_v35 = vpack.c.bf16 %v533_v29, %v510_v20  ;;  %v1165_v36 = vpack.c.bf16 %v532_v31, %v509_v30 }
  0xaa   : > { %v530_v37 = vsel %vm529_vm5, %v520_v32, %v1598_v25  ;;  %v507_v38 = vsel %vm506_vm4, %v497_v33, %v1588_v16  ;;  %vm879_vm4 = vcmask 760832   ;;  %vm902_vm5 = vcmask 752640  }
  0xab   : > { %v1163_v39 = vpack.c.bf16 %v530_v37, %v507_v38  ;;  %1796 = vrot.lane.b32.xlu1 %v1947_v15, %s1855_s10  ;;  %1237 = vmatprep.subr.bf16.mxu0 %v1164_v34 }
  0xac   : > { %961 = vrot.lane.b32.xlu0 %v1932_v6, %s1854_s30  ;;  %1278 = vmatprep.subr.bf16.mxu1 %v1166_v35 }
  0xad   : > { %1279 = vmatpush1.bf16.msra.mxu1 %v1165_v36  ;;  %v1612_v40 = vpop.permute.xlu1 %1611  ;;  %v1607_v41 = vpop.permute.xlu0 %1606  ;;  %1238 = vmatpush1.bf16.msra.mxu0 %v1163_v39 }
  0xae   : > { %v1614_v42 = vunpack.i.h.bf16 %v1612_v40  ;;  %v1613_v44 = vunpack.i.l.bf16 %v1612_v40  ;;  %v1609_v45 = vunpack.i.h.bf16 %v1607_v41  ;;  %v1608_v46 = vunpack.i.l.bf16 %v1607_v41 }
  0xaf   : > { %984 = vrot.lane.b32.xlu1 %v1932_v6, %s1855_s10 }
  0xb0   : > { %1801 = vrot.lane.b32.xlu0 %v1951_v17, %s1855_s10  ;;  %v556_v48 = vsel %vm552_vm6, %v1613_v44, %v1614_v42  ;;  %v554_v54 = vsel %vm552_vm6, %v1608_v46, %v1609_v45  ;;  %v555_v56 = vsel %vm552_vm6, %v1609_v45, %v1613_v44 }
  0xb1   : > { %v1622_v15 = vpop.permute.xlu1 %1621  ;;  %v1617_v47 = vpop.permute.xlu0 %1616 }
  0xb2   : > { %v1624_v50 = vunpack.i.h.bf16 %v1622_v15  ;;  %v1623_v51 = vunpack.i.l.bf16 %v1622_v15  ;;  %v1619_v52 = vunpack.i.h.bf16 %v1617_v47  ;;  %v1618_v53 = vunpack.i.l.bf16 %v1617_v47 }
  0xb4   : > { %v577_v55 = vsel %vm575_vm7, %v1618_v53, %v1619_v52  ;;  %v579_v17 = vsel %vm575_vm7, %v1623_v51, %v1624_v50  ;;  %v578_v57 = vsel %vm575_vm7, %v1619_v52, %v1623_v51  ;;  %1223 = vperm.xlu0 %1805, %v1220_v49  }
  0xb5   : > { %v566_v58 = vpop.permute.xlu1 %565  ;;  %v543_v59 = vpop.permute.xlu0 %542  ;;  %v1168_v60 = vpack.c.bf16 %v577_v55, %v554_v54  ;;  %v1170_v61 = vpack.c.bf16 %v579_v17, %v556_v48  ;;  %v1169_v62 = vpack.c.bf16 %v578_v57, %v555_v56 }
  0xb6   : > { %v576_v63 = vsel %vm575_vm7, %v566_v58, %v1618_v53  ;;  %v553_v0 = vsel %vm552_vm6, %v543_v59, %v1608_v46  ;;  %vm925_vm6 = vcmask 744448   ;;  %vm948_vm7 = vcmask 711680  }
  0xb7   : > { %v1167_v1 = vpack.c.bf16 %v576_v63, %v553_v0  ;;  %1239 = vmatprep.subr.bf16.mxu0 %v1168_v60  ;;  %1280 = vmatprep.subr.bf16.mxu1 %v1170_v61 }
  0xb8   : > { %1281 = vmatpush1.bf16.msra.mxu1 %v1169_v62 }
  0xb9   : > { %v1632_v2 = vpop.permute.xlu1 %1631  ;;  %v1627_v3 = vpop.permute.xlu0 %1626  ;;  %1240 = vmatpush1.bf16.msra.mxu0 %v1167_v1 }
  0xba   : > { %v1634_v4 = vunpack.i.h.bf16 %v1632_v2  ;;  %v1633_v5 = vunpack.i.l.bf16 %v1632_v2  ;;  %v1629_v10 = vunpack.i.h.bf16 %v1627_v3  ;;  %v1628_v11 = vunpack.i.l.bf16 %v1627_v3 }
  0xbc   : > { %v602_v14 = vsel %vm598_vm8, %v1633_v5, %v1634_v4  ;;  %v600_v22 = vsel %vm598_vm8, %v1628_v11, %v1629_v10  ;;  %v601_v25 = vsel %vm598_vm8, %v1629_v10, %v1633_v5 }
  0xbd   : > { %v1642_v12 = vpop.permute.xlu1 %1641  ;;  %v1637_v13 = vpop.permute.xlu0 %1636 }
  0xbe   : > { %v1644_v16 = vunpack.i.h.bf16 %v1642_v12  ;;  %v1643_v18 = vunpack.i.l.bf16 %v1642_v12  ;;  %v1639_v19 = vunpack.i.h.bf16 %v1637_v13  ;;  %v1638_v20 = vunpack.i.l.bf16 %v1637_v13 }
  0xc0   : > { %v623_v23 = vsel %vm621_vm9, %v1638_v20, %v1639_v19  ;;  %v625_v24 = vsel %vm621_vm9, %v1643_v18, %v1644_v16  ;;  %v624_v26 = vsel %vm621_vm9, %v1639_v19, %v1643_v18 }
  0xc1   : > { %v612_v27 = vpop.permute.xlu1 %611  ;;  %v589_v28 = vpop.permute.xlu0 %588  ;;  %v1172_v29 = vpack.c.bf16 %v623_v23, %v600_v22  ;;  %v1174_v30 = vpack.c.bf16 %v625_v24, %v602_v14  ;;  %v1173_v31 = vpack.c.bf16 %v624_v26, %v601_v25 }
  0xc2   : > { %v622_v32 = vsel %vm621_vm9, %v612_v27, %v1638_v20  ;;  %v599_v33 = vsel %vm598_vm8, %v589_v28, %v1628_v11  ;;  %vm971_vm8 = vcmask 703488   ;;  %vm994_vm9 = vcmask 695296  }
  0xc3   : > { %v1171_v34 = vpack.c.bf16 %v622_v32, %v599_v33  ;;  %1241 = vmatprep.subr.bf16.mxu0 %v1172_v29  ;;  %1282 = vmatprep.subr.bf16.mxu1 %v1174_v30 }
  0xc4   : > { %1283 = vmatpush1.bf16.msra.mxu1 %v1173_v31 }
  0xc5   : > { %v1652_v35 = vpop.permute.xlu1 %1651  ;;  %v1647_v36 = vpop.permute.xlu0 %1646  ;;  %1242 = vmatpush1.bf16.msra.mxu0 %v1171_v34 }
  0xc6   : > { %v1654_v37 = vunpack.i.h.bf16 %v1652_v35  ;;  %v1653_v38 = vunpack.i.l.bf16 %v1652_v35  ;;  %v1649_v39 = vunpack.i.h.bf16 %v1647_v36  ;;  %v1648_v40 = vunpack.i.l.bf16 %v1647_v36 }
  0xc8   : > { %v648_v43 = vsel %vm644_vm10, %v1653_v38, %v1654_v37  ;;  %v646_v47 = vsel %vm644_vm10, %v1648_v40, %v1649_v39  ;;  %v647_v50 = vsel %vm644_vm10, %v1649_v39, %v1653_v38 }
  0xc9   : > { %v1662_v41 = vpop.permute.xlu1 %1661  ;;  %v1657_v42 = vpop.permute.xlu0 %1656 }
  0xca   : > { %v1664_v44 = vunpack.i.h.bf16 %v1662_v41  ;;  %v1663_v45 = vunpack.i.l.bf16 %v1662_v41  ;;  %v1659_v46 = vunpack.i.h.bf16 %v1657_v42  ;;  %v1658_v15 = vunpack.i.l.bf16 %v1657_v42 }
  0xcc   : > { %v669_v48 = vsel %vm667_vm11, %v1658_v15, %v1659_v46  ;;  %v671_v49 = vsel %vm667_vm11, %v1663_v45, %v1664_v44  ;;  %v670_v51 = vsel %vm667_vm11, %v1659_v46, %v1663_v45 }
  0xcd   : > { %v658_v52 = vpop.permute.xlu1 %657  ;;  %v635_v53 = vpop.permute.xlu0 %634  ;;  %v1176_v54 = vpack.c.bf16 %v669_v48, %v646_v47  ;;  %v1178_v55 = vpack.c.bf16 %v671_v49, %v648_v43  ;;  %v1177_v17 = vpack.c.bf16 %v670_v51, %v647_v50 }
  0xce   : > { %v668_v56 = vsel %vm667_vm11, %v658_v52, %v1658_v15  ;;  %v645_v57 = vsel %vm644_vm10, %v635_v53, %v1648_v40 }
  0xcf   : > { %v1175_v58 = vpack.c.bf16 %v668_v56, %v645_v57  ;;  %1243 = vmatprep.subr.bf16.mxu0 %v1176_v54  ;;  %1284 = vmatprep.subr.bf16.mxu1 %v1178_v55 }
  0xd0   : > { %1285 = vmatpush1.bf16.msra.mxu1 %v1177_v17 }
  0xd1   : > { %v1672_v59 = vpop.permute.xlu1 %1671  ;;  %v1667_v60 = vpop.permute.xlu0 %1666  ;;  %1244 = vmatpush1.bf16.msra.mxu0 %v1175_v58 }
  0xd2   : > { %v1674_v61 = vunpack.i.h.bf16 %v1672_v59  ;;  %v1673_v62 = vunpack.i.l.bf16 %v1672_v59  ;;  %v1669_v63 = vunpack.i.h.bf16 %v1667_v60  ;;  %v1668_v0 = vunpack.i.l.bf16 %v1667_v60 }
  0xd4   : > { %v692_v1 = vsel %vm690_vm12, %v1668_v0, %v1669_v63  ;;  %v694_v2 = vsel %vm690_vm12, %v1673_v62, %v1674_v61  ;;  %v693_v3 = vsel %vm690_vm12, %v1669_v63, %v1673_v62 }
  0xd5   : > { %v1677_v4 = vpop.permute.xlu1 %1676  ;;  %v681_v5 = vpop.permute.xlu0 %680  ;;  %v1180_v10 = vpack.c.bf16 %v1934_v7, %v692_v1  ;;  %v1182_v11 = vpack.c.bf16 %v1938_v9, %v694_v2  ;;  %v1181_v12 = vpack.c.bf16 %v1936_v8, %v693_v3 }
  0xd6   : > { %v1679_v13 = vunpack.i.h.bf16 %v1677_v4  ;;  %v1678_v14 = vunpack.i.l.bf16 %v1677_v4  ;;  %v691_v16 = vsel %vm690_vm12, %v681_v5, %v1668_v0 }
  0xd7   : > { %v1179_v18 = vpack.c.bf16 %v1932_v6, %v691_v16  ;;  %1245 = vmatprep.subr.bf16.mxu0 %v1180_v10  ;;  %1286 = vmatprep.subr.bf16.mxu1 %v1182_v11 }
  0xd8   : > { %1287 = vmatpush1.bf16.msra.mxu1 %v1181_v12  ;;  %v720_v7 = vsel %vm718_vm13, %v1678_v14, %v1679_v13 }
  0xd9   : > { %v1687_v19 = vpop.permute.xlu1 %1686  ;;  %v1682_v20 = vpop.permute.xlu0 %1681  ;;  %1246 = vmatpush1.bf16.msra.mxu0 %v1179_v18 }
  0xda   : > { %v1689_v22 = vunpack.i.h.bf16 %v1687_v19  ;;  %v1688_v23 = vunpack.i.l.bf16 %v1687_v19  ;;  %v1684_v9 = vunpack.i.h.bf16 %v1682_v20  ;;  %v1683_v24 = vunpack.i.l.bf16 %v1682_v20 }
  0xdc   : > { %v743_v8 = vsel %vm741_vm14, %v1688_v23, %v1689_v22  ;;  %v722_v29 = vsel %vm718_vm13, %v1683_v24, %v1684_v9  ;;  %v721_v31 = vsel %vm718_vm13, %v1679_v13, %v1683_v24 }
  0xdd   : > { %v709_v25 = vpop.permute.xlu1 %708  ;;  %v1692_v26 = vpop.permute.xlu0 %1691  ;;  %v1184_v27 = vpack.c.bf16 %v743_v8, %v720_v7 }
  0xde   : > { %v1694_v6 = vunpack.i.h.bf16 %v1692_v26  ;;  %v1693_v28 = vunpack.i.l.bf16 %v1692_v26  ;;  %v719_v37 = vsel %vm718_vm13, %v709_v25, %v1678_v14 }
  0xdf   : > { %1247 = vmatprep.subr.bf16.mxu0 %v1184_v27 }
  0xe0   : > { %v745_v30 = vsel %vm741_vm14, %v1693_v28, %v1694_v6  ;;  %v744_v32 = vsel %vm741_vm14, %v1689_v22, %v1693_v28 }
  0xe1   : > { %v1697_v33 = vpop.permute.xlu1 %1696  ;;  %v732_v34 = vpop.permute.xlu0 %731  ;;  %v1186_v35 = vpack.c.bf16 %v745_v30, %v722_v29  ;;  %v1185_v36 = vpack.c.bf16 %v744_v32, %v721_v31 }
  0xe2   : > { %v1699_v38 = vunpack.i.h.bf16 %v1697_v33  ;;  %v1698_v39 = vunpack.i.l.bf16 %v1697_v33  ;;  %v742_v40 = vsel %vm741_vm14, %v732_v34, %v1688_v23 }
  0xe3   : > { %v1183_v41 = vpack.c.bf16 %v742_v40, %v719_v37  ;;  %1288 = vmatprep.subr.bf16.mxu1 %v1186_v35 }
  0xe4   : > { %1289 = vmatpush1.bf16.msra.mxu1 %v1185_v36  ;;  %v766_v46 = vsel %vm764_vm15, %v1698_v39, %v1699_v38 }
  0xe5   : > { %v1707_v42 = vpop.permute.xlu1 %1706  ;;  %v1702_v43 = vpop.permute.xlu0 %1701  ;;  %1248 = vmatpush1.bf16.msra.mxu0 %v1183_v41 }
  0xe6   : > { %v1709_v44 = vunpack.i.h.bf16 %v1707_v42  ;;  %v1708_v45 = vunpack.i.l.bf16 %v1707_v42  ;;  %v1704_v15 = vunpack.i.h.bf16 %v1702_v43  ;;  %v1703_v47 = vunpack.i.l.bf16 %v1702_v43 }
  0xe8   : > { %v789_v48 = vsel %vm787_vm0, %v1708_v45, %v1709_v44  ;;  %v768_v54 = vsel %vm764_vm15, %v1703_v47, %v1704_v15  ;;  %v767_v17 = vsel %vm764_vm15, %v1699_v38, %v1703_v47 }
  0xe9   : > { %v755_v49 = vpop.permute.xlu1 %754  ;;  %v1712_v50 = vpop.permute.xlu0 %1711  ;;  %v1188_v51 = vpack.c.bf16 %v789_v48, %v766_v46 }
  0xea   : > { %v1714_v52 = vunpack.i.h.bf16 %v1712_v50  ;;  %v1713_v53 = vunpack.i.l.bf16 %v1712_v50  ;;  %v765_v61 = vsel %vm764_vm15, %v755_v49, %v1698_v39 }
  0xeb   : > { %1249 = vmatprep.subr.bf16.mxu0 %v1188_v51 }
  0xec   : > { %v791_v55 = vsel %vm787_vm0, %v1713_v53, %v1714_v52  ;;  %v790_v56 = vsel %vm787_vm0, %v1709_v44, %v1713_v53 }
  0xed   : > { %v1717_v57 = vpop.permute.xlu1 %1716  ;;  %v778_v58 = vpop.permute.xlu0 %777  ;;  %v1190_v59 = vpack.c.bf16 %v791_v55, %v768_v54  ;;  %v1189_v60 = vpack.c.bf16 %v790_v56, %v767_v17 }
  0xee   : > { %v1719_v62 = vunpack.i.h.bf16 %v1717_v57  ;;  %v1718_v63 = vunpack.i.l.bf16 %v1717_v57  ;;  %v788_v0 = vsel %vm787_vm0, %v778_v58, %v1708_v45 }
  0xef   : > { %v1187_v1 = vpack.c.bf16 %v788_v0, %v765_v61  ;;  %1290 = vmatprep.subr.bf16.mxu1 %v1190_v59 }
  0xf0   : > { %1291 = vmatpush1.bf16.msra.mxu1 %v1189_v60  ;;  %v812_v10 = vsel %vm810_vm1, %v1718_v63, %v1719_v62 }
  0xf1   : > { %v1727_v2 = vpop.permute.xlu1 %1726  ;;  %v1722_v3 = vpop.permute.xlu0 %1721  ;;  %1250 = vmatpush1.bf16.msra.mxu0 %v1187_v1 }
  0xf2   : > { %v1729_v4 = vunpack.i.h.bf16 %v1727_v2  ;;  %v1728_v5 = vunpack.i.l.bf16 %v1727_v2  ;;  %v1724_v11 = vunpack.i.h.bf16 %v1722_v3  ;;  %v1723_v12 = vunpack.i.l.bf16 %v1722_v3 }
  0xf4   : > { %v835_v13 = vsel %vm833_vm2, %v1728_v5, %v1729_v4  ;;  %v814_v22 = vsel %vm810_vm1, %v1723_v12, %v1724_v11  ;;  %v813_v7 = vsel %vm810_vm1, %v1719_v62, %v1723_v12 }
  0xf5   : > { %v801_v14 = vpop.permute.xlu1 %800  ;;  %v1732_v16 = vpop.permute.xlu0 %1731  ;;  %v1192_v18 = vpack.c.bf16 %v835_v13, %v812_v10 }
  0xf6   : > { %v1734_v19 = vunpack.i.h.bf16 %v1732_v16  ;;  %v1733_v20 = vunpack.i.l.bf16 %v1732_v16  ;;  %v811_v27 = vsel %vm810_vm1, %v801_v14, %v1718_v63 }
  0xf7   : > { %1251 = vmatprep.subr.bf16.mxu0 %v1192_v18 }
  0xf8   : > { %v837_v23 = vsel %vm833_vm2, %v1733_v20, %v1734_v19  ;;  %v836_v9 = vsel %vm833_vm2, %v1729_v4, %v1733_v20 }
  0xf9   : > { %v1737_v24 = vpop.permute.xlu1 %1736  ;;  %v824_v8 = vpop.permute.xlu0 %823  ;;  %v1194_v25 = vpack.c.bf16 %v837_v23, %v814_v22  ;;  %v1193_v26 = vpack.c.bf16 %v836_v9, %v813_v7 }
  0xfa   : > { %v1739_v6 = vunpack.i.h.bf16 %v1737_v24  ;;  %v1738_v28 = vunpack.i.l.bf16 %v1737_v24  ;;  %v834_v29 = vsel %vm833_vm2, %v824_v8, %v1728_v5 }
  0xfb   : > { %v1191_v30 = vpack.c.bf16 %v834_v29, %v811_v27  ;;  %1292 = vmatprep.subr.bf16.mxu1 %v1194_v25 }
  0xfc   : > { %1293 = vmatpush1.bf16.msra.mxu1 %v1193_v26  ;;  %v858_v35 = vsel %vm856_vm3, %v1738_v28, %v1739_v6 }
  0xfd   : > { %v1747_v31 = vpop.permute.xlu1 %1746  ;;  %v1742_v32 = vpop.permute.xlu0 %1741  ;;  %1252 = vmatpush1.bf16.msra.mxu0 %v1191_v30 }
  0xfe   : > { %v1749_v33 = vunpack.i.h.bf16 %v1747_v31  ;;  %v1748_v34 = vunpack.i.l.bf16 %v1747_v31  ;;  %v1744_v37 = vunpack.i.h.bf16 %v1742_v32  ;;  %v1743_v38 = vunpack.i.l.bf16 %v1742_v32 }
 0x100   : > { %v881_v36 = vsel %vm879_vm4, %v1748_v34, %v1749_v33  ;;  %v860_v45 = vsel %vm856_vm3, %v1743_v38, %v1744_v37  ;;  %v859_v15 = vsel %vm856_vm3, %v1739_v6, %v1743_v38 }
 0x101   : > { %v847_v39 = vpop.permute.xlu1 %846  ;;  %v1196_v40 = vpack.c.bf16 %v881_v36, %v858_v35 }
 0x102   : > { %v1752_v41 = vpop.permute.xlu0 %1751  ;;  %v857_v53 = vsel %vm856_vm3, %v847_v39, %v1738_v28 }
 0x103   : > { %v1754_v42 = vunpack.i.h.bf16 %v1752_v41  ;;  %v1753_v43 = vunpack.i.l.bf16 %v1752_v41  ;;  %1253 = vmatprep.subr.bf16.mxu0 %v1196_v40 }
 0x105   : > { %v1757_v44 = vpop.permute.xlu1 %1756  ;;  %v883_v46 = vsel %vm879_vm4, %v1753_v43, %v1754_v42  ;;  %v882_v47 = vsel %vm879_vm4, %v1749_v33, %v1753_v43 }
 0x106   : > { %v1759_v48 = vunpack.i.h.bf16 %v1757_v44  ;;  %v1758_v49 = vunpack.i.l.bf16 %v1757_v44  ;;  %v870_v50 = vpop.permute.xlu0 %869  ;;  %v1198_v51 = vpack.c.bf16 %v883_v46, %v860_v45  ;;  %v1197_v52 = vpack.c.bf16 %v882_v47, %v859_v15 }
 0x107   : > { %v880_v54 = vsel %vm879_vm4, %v870_v50, %v1748_v34  ;;  %v1857_v47 = vmov 0.0  }
 0x108   : > { %v1195_v55 = vpack.c.bf16 %v880_v54, %v857_v53  ;;  %1294 = vmatprep.subr.bf16.mxu1 %v1198_v51  ;;  %v904_v59 = vsel %vm902_vm5, %v1758_v49, %v1759_v48  ;;  %v1496_v54 = vcombine.low %v2006_v21, %v2006_v21 }
 0x109   : > { %1295 = vmatpush1.bf16.msra.mxu1 %v1197_v52  ;;  %v1767_v17 = vpop.permute.xlu1 %1766 }
 0x10a   : > { %v1769_v56 = vunpack.i.h.bf16 %v1767_v17  ;;  %v1768_v57 = vunpack.i.l.bf16 %v1767_v17  ;;  %v1762_v58 = vpop.permute.xlu0 %1761  ;;  %1254 = vmatpush1.bf16.msra.mxu0 %v1195_v55 }
 0x10b   : > { %v1764_v61 = vunpack.i.h.bf16 %v1762_v58  ;;  %v1763_v62 = vunpack.i.l.bf16 %v1762_v58 }
 0x10c   : > { %v927_v60 = vsel %vm925_vm6, %v1768_v57, %v1769_v56 }
 0x10d   : > { %v893_v63 = vpop.permute.xlu1 %892  ;;  %v1200_v0 = vpack.c.bf16 %v927_v60, %v904_v59  ;;  %v906_v5 = vsel %vm902_vm5, %v1763_v62, %v1764_v61  ;;  %v905_v11 = vsel %vm902_vm5, %v1759_v48, %v1763_v62 }
 0x10e   : > { %v1772_v1 = vpop.permute.xlu0 %1771  ;;  %v903_v20 = vsel %vm902_vm5, %v893_v63, %v1758_v49 }
 0x10f   : > { %v1774_v2 = vunpack.i.h.bf16 %v1772_v1  ;;  %v1773_v3 = vunpack.i.l.bf16 %v1772_v1  ;;  %1255 = vmatprep.subr.bf16.mxu0 %v1200_v0  ;;  %v1337_v1 = vlaneseq }
 0x111   : > { %v1777_v4 = vpop.permute.xlu1 %1776  ;;  %v929_v10 = vsel %vm925_vm6, %v1773_v3, %v1774_v2  ;;  %v928_v12 = vsel %vm925_vm6, %v1769_v56, %v1773_v3 }
 0x112   : > { %v1779_v13 = vunpack.i.h.bf16 %v1777_v4  ;;  %v1778_v14 = vunpack.i.l.bf16 %v1777_v4  ;;  %v916_v16 = vpop.permute.xlu0 %915  ;;  %v1202_v18 = vpack.c.bf16 %v929_v10, %v906_v5  ;;  %v1201_v19 = vpack.c.bf16 %v928_v12, %v905_v11 }
 0x113   : > { %v926_v22 = vsel %vm925_vm6, %v916_v16, %v1768_v57 }
 0x114   : > { %v1199_v23 = vpack.c.bf16 %v926_v22, %v903_v20  ;;  %1296 = vmatprep.subr.bf16.mxu1 %v1202_v18  ;;  %v950_v25 = vsel %vm948_vm7, %v1778_v14, %v1779_v13 }
 0x115   : > { %1297 = vmatpush1.bf16.msra.mxu1 %v1201_v19  ;;  %v1787_v7 = vpop.permute.xlu1 %1786  ;;  %v1335_v19 = vld [vmem:[%s352_s9] sm:$0xf] }
 0x116   : > { %v1789_v9 = vunpack.i.h.bf16 %v1787_v7  ;;  %v1788_v24 = vunpack.i.l.bf16 %v1787_v7  ;;  %v1782_v8 = vpop.permute.xlu0 %1781  ;;  %1256 = vmatpush1.bf16.msra.mxu0 %v1199_v23 }
 0x117   : > { %v1784_v27 = vunpack.i.h.bf16 %v1782_v8  ;;  %v1783_v6 = vunpack.i.l.bf16 %v1782_v8 }
 0x118   : > { %v973_v26 = vsel %vm971_vm8, %v1788_v24, %v1789_v9 }
 0x119   : > { %v939_v28 = vpop.permute.xlu1 %938  ;;  %v1204_v29 = vpack.c.bf16 %v973_v26, %v950_v25  ;;  %v952_v34 = vsel %vm948_vm7, %v1783_v6, %v1784_v27  ;;  %v951_v36 = vsel %vm948_vm7, %v1779_v13, %v1783_v6 }
 0x11a   : > { %v1792_v30 = vpop.permute.xlu0 %1791  ;;  %v949_v43 = vsel %vm948_vm7, %v939_v28, %v1778_v14  ;;  %v1338_v14 = vshrl.u32 %v1337_v1, 7 }
 0x11b   : > { %v1794_v31 = vunpack.i.h.bf16 %v1792_v30  ;;  %v1793_v32 = vunpack.i.l.bf16 %v1792_v30  ;;  %1257 = vmatprep.subr.bf16.mxu0 %v1204_v29 }
 0x11c   : > { %v1339_v18 = vsub.s32 0, %v1338_v14  ;;  %v1343_v20 = vsub.s32 1, %v1338_v14  ;;  %v1347_v22 = vsub.s32 2, %v1338_v14 }
 0x11d   : > { %v1797_v33 = vpop.permute.xlu1 %1796  ;;  %v975_v35 = vsel %vm971_vm8, %v1793_v32, %v1794_v31  ;;  %v974_v37 = vsel %vm971_vm8, %v1789_v9, %v1793_v32  ;;  %v1351_v9 = vsub.s32 3, %v1338_v14 }
 0x11e   : > { %v1799_v38 = vunpack.i.h.bf16 %v1797_v33  ;;  %v1798_v39 = vunpack.i.l.bf16 %v1797_v33  ;;  %v962_v40 = vpop.permute.xlu0 %961  ;;  %v1206_v41 = vpack.c.bf16 %v975_v35, %v952_v34  ;;  %v1205_v42 = vpack.c.bf16 %v974_v37, %v951_v36 }
 0x11f   : > { %v972_v44 = vsel %vm971_vm8, %v962_v40, %v1788_v24  ;;  %v1340_v7 = vrot.slane %v1335_v19, %v1339_v18  ;;  %v1344_v25 = vrot.slane %v1335_v19, %v1343_v20  ;;  %v1348_v28 = vrot.slane %v1335_v19, %v1347_v22 }
 0x120   : > { %v1203_v45 = vpack.c.bf16 %v972_v44, %v949_v43  ;;  %1298 = vmatprep.subr.bf16.mxu1 %v1206_v41  ;;  %v996_v46 = vsel %vm994_vm9, %v1798_v39, %v1799_v38  ;;  %v1352_v33 = vrot.slane %v1335_v19, %v1351_v9 }
 0x121   : > { %1299 = vmatpush1.bf16.msra.mxu1 %v1205_v42  ;;  %v985_v15 = vpop.permute.xlu1 %984  ;;  %v1208_v48 = vpack.c.bf16 %v1857_v47, %v996_v46 }
 0x122   : > { %v995_v49 = vsel %vm994_vm9, %v985_v15, %v1798_v39  ;;  %v1802_v50 = vpop.permute.xlu0 %1801  ;;  %1258 = vmatpush1.bf16.msra.mxu0 %v1203_v45 }
 0x123   : > { %v1207_v51 = vpack.c.bf16 %v1857_v47, %v995_v49  ;;  %v1804_v52 = vunpack.i.h.bf16 %v1802_v50  ;;  %v1803_v53 = vunpack.i.l.bf16 %v1802_v50  ;;  %1259 = vmatprep.subr.bf16.mxu0 %v1208_v48 }
 0x125   : > { %v998_v55 = vsel %vm994_vm9, %v1803_v53, %v1804_v52  ;;  %v997_v17 = vsel %vm994_vm9, %v1799_v38, %v1803_v53 }
 0x126   : > { %1260 = vmatpush1.bf16.msra.mxu0 %v1207_v51  ;;  %v1210_v56 = vpack.c.bf16 %v1857_v47, %v998_v55  ;;  %v1209_v57 = vpack.c.bf16 %v1857_v47, %v997_v17 }
 0x128   : > { %1300 = vmatprep.subr.bf16.mxu1 %v1210_v56 }
 0x129   : > { %1266 = vmatmul.mubr.bf16.vlgmr.msra.gmra.mrb[0].mxu0 %v1496_v54  ;;  %1301 = vmatpush1.bf16.msra.mxu1 %v1209_v57 }
 0x12c   : > { %1307 = vmatmul.mubr.bf16.vlgmr.msra.gmra.mrb[0].mxu1 %v1496_v54 }
 0x133   : > { %v1224_v58 = vpop.permute.xlu0 %1223 }
 0x1fc   : > { %v1267_v59 = vpop.f32.mrb[0].mxu0 }
 0x1fd   : > { %v1268_v60 = vadd.f32 %v1267_v59, %v1224_v58  ;;  %v1269_v61 = vpop.f32.mrb[1].mxu0 }
 0x1fe   : > { %v1270_v62 = vadd.f32 %v1269_v61, %v1224_v58  ;;  %v1271_v63 = vpop.f32.mrb[2].mxu0 }
 0x1ff   : > { %v1319_v0 = vmul.f32 1.442695, %v1268_v60  ;;  %v1272_v21 = vpop.f32.mrb[3].mxu0  ;;  %v1308_v2 = vpop.f32.mrb[0].mxu1  ;;  %vm1315_vm10 = vcmp.gt.f32.partialorder %v1268_v60, 0.0 }
 0x200   : > { %v1321_v3 = vmul.f32 1.442695, %v1270_v62  ;;  %v1309_v4 = vadd.f32 %v1308_v2, %v1224_v58  ;;  %v1310_v5 = vpop.f32.mrb[1].mxu1  ;;  %vm1316_vm11 = vcmp.gt.f32.partialorder %v1270_v62, 0.0 }
 0x201   : > { %1814 = vpow2.f32 %v1319_v0  ;;  %v1311_v10 = vadd.f32 %v1310_v5, %v1224_v58  ;;  %v1312_v11 = vpop.f32.mrb[2].mxu1 }
 0x202   : > { %1816 = vpow2.f32 %v1321_v3  ;;  %v1323_v12 = vmul.f32 1.442695, %v1309_v4  ;;  %v1313_v13 = vpop.f32.mrb[3].mxu1  ;;  %vm1317_vm12 = vcmp.gt.f32.partialorder %v1309_v4, 0.0 }
 0x203   : > { %v1325_v16 = vmul.f32 1.442695, %v1311_v10  ;;  %vm1318_vm13 = vcmp.gt.f32.partialorder %v1311_v10, 0.0 }
 0x204   : > { %1818 = vpow2.f32 %v1323_v12 }
 0x205   : > { %1820 = vpow2.f32 %v1325_v16 }
 0x20b   : > { %v1815_v23 = vpop.eup %1814 }
 0x20c   : > { %v1817_v24 = vpop.eup %1816  ;;  %v1498_v8 = vadd.f32 -1.0, %v1815_v23 }
 0x20d   : > { %v1499_v26 = vadd.f32 -1.0, %v1817_v24 }
 0x20e   : > { %v1819_v27 = vpop.eup %1818  ;;  %v1331_v6 = vsel %vm1315_vm10, %v1268_v60, %v1498_v8 }
 0x20f   : > { %v1821_v29 = vpop.eup %1820  ;;  %v1357_v30 = vmul.f32 %v1340_v7, %v1331_v6  ;;  %v1332_v31 = vsel %vm1316_vm11, %v1270_v62, %v1499_v26  ;;  %v1500_v32 = vadd.f32 -1.0, %v1819_v27 }
 0x210   : > { %v1358_v34 = vmul.f32 %v1344_v25, %v1332_v31  ;;  %v1501_v35 = vadd.f32 -1.0, %v1821_v29 }
 0x211   : > { %v1333_v36 = vsel %vm1317_vm12, %v1309_v4, %v1500_v32 }
 0x212   : > { %v1506_v37 = vpack.c.bf16 %v1358_v34, %v1357_v30  ;;  %v1359_v38 = vmul.f32 %v1348_v28, %v1333_v36  ;;  %v1334_v39 = vsel %vm1318_vm13, %v1311_v10, %v1501_v35 }
 0x213   : > { %v1360_v40 = vmul.f32 %v1352_v33, %v1334_v39 }
 0x214   : > { %1377 = vst [vmem:[%s1915_s13] sm:$0xff] %v1506_v37 }
 0x215   : > { %v1507_v41 = vpack.c.bf16 %v1360_v40, %v1359_v38 }
 0x217   : > { %1378 = vst [vmem:[%s1915_s13 + $0x8] sm:$0xff] %v1507_v41 }
 0x218 PF: > { %1381 = sbr.rel (!%p1921_p10) target bundleno = 543 (0x21f), region = 52  ;;  %v1858_v42 = vmov (%p1921_p10), 0  }
 0x219   : > { %1382 = vst [vmem:[%s1915_s13] sm:$0xff] (%p1921_p10), %v1858_v42  ;;  %1383 = vst [vmem:[%s1915_s13 + $0x8] sm:$0xff] (%p1921_p10), %v1858_v42 }
 0x21f PF: > { %s16_s21 = sadd.s32 1, %s1828_s21  }
 0x220   : > { %p13_p11 = scmp.ge.s32.totalorder %s16_s21, 5  }
 0x222   :  { %15 = sbr.rel (!%p13_p11) target bundleno = 1 (0x1), region = 91 }

</bundles_post_ra>
